<compile_context>
chip_gen: v7x
topology: tpu7x:2x2x1
jax: 0.10.0
libtpu: 0.0.40
codegen_flags: <defaults>
</compile_context>

<pallas_src>
import jax
import jax.numpy as jnp
from jax.experimental import pallas as pl
from jax.experimental.pallas import tpu as pltpu


def _seghead_kernel(x_ref, s1_ref, b1_ref, w1_ref, s2_ref, b2_ref,
                    w2_ref, cb2_ref, out_ref, y_ref):
    # x_ref  : (Cin, TH+2, W)  bf16 row tile with 2-row halo (boundary halo rows
    #                          are wrapper-padded zeros, interior ones real data)
    # s1,b1  : (Cin, 1)  f32   folded BN1 scale / shift
    # w1_ref : (Cmid, 9*Cin)   bf16, 3x3 taps in (dy, dx, cin) column order
    # s2,b2  : (Cmid, 1) f32   folded BN2 scale / shift
    # w2_ref : (Cout, Cmid)    bf16 1x1 conv weight
    # cb2    : (Cout, 1) f32   1x1 conv bias
    # out_ref: (Cout, TH*W)    f32 (lane-dense: TH*W is a multiple of 128)
    # y_ref  : VMEM scratch (Cin, TH+2, W+2) bf16 — BN1+ReLU result with halo
    Cin, th_p2, W = x_ref.shape
    TH = th_p2 - 2
    r = pl.program_id(1)
    last_r = pl.num_programs(1) - 1

    # ---- BN1 + ReLU (f32 math), write into the haloed scratch ---------------
    xt = x_ref[...].astype(jnp.float32)                      # (Cin, TH+2, W)
    s1 = s1_ref[...].reshape(Cin, 1, 1)
    b1 = b1_ref[...].reshape(Cin, 1, 1)
    act = jnp.maximum(xt * s1 + b1, 0.0).astype(y_ref.dtype)

    # Zero only the 1-wide conv halo (relu(bn1(0)) != 0, but conv padding must
    # stay zero): left/right columns always; top/bottom rows only when this
    # row tile touches the image boundary (interior halo rows keep real data).
    zcol = jnp.zeros((Cin, th_p2, 1), y_ref.dtype)
    y_ref[:, :, pl.ds(0, 1)] = zcol
    y_ref[:, :, pl.ds(W + 1, 1)] = zcol
    y_ref[:, :, pl.ds(1, W)] = act

    @pl.when(r == 0)
    def _():
        y_ref[:, pl.ds(0, 1), :] = jnp.zeros((Cin, 1, W + 2), y_ref.dtype)

    @pl.when(r == last_r)
    def _():
        y_ref[:, pl.ds(th_p2 - 1, 1), :] = jnp.zeros((Cin, 1, W + 2), y_ref.dtype)

    # ---- conv1 (3x3, pad=1, no bias): one fused MXU contraction, K = 9*Cin ---
    cols = []
    for dy in range(3):
        for dx in range(3):
            win = y_ref[:, pl.ds(dy, TH), pl.ds(dx, W)]       # (Cin, TH, W) bf16
            cols.append(win.reshape(Cin, TH * W))
    patch = jnp.concatenate(cols, axis=0)                     # (9*Cin, TH*W) bf16
    h = jnp.dot(w1_ref[...], patch,
                preferred_element_type=jnp.float32)           # (Cmid, TH*W) f32

    # ---- BN2 + ReLU (f32), conv2 (1x1, with bias) ----------------------------
    h = jnp.maximum(h * s2_ref[...] + b2_ref[...], 0.0)
    o = jnp.dot(w2_ref[...], h.astype(w2_ref.dtype),
                preferred_element_type=jnp.float32) + cb2_ref[...]
    out_ref[...] = o.astype(out_ref.dtype)


def _pick_tile_rows(H, W, Cin, requested):
    """Largest divisor of H under the row budget whose flat tile (TH*W) is a
    multiple of 128 lanes; falls back to the full image (always legal)."""
    divisors = [d for d in range(1, H + 1) if H % d == 0]
    if requested is not None:
        cand = [d for d in divisors if d <= max(1, min(requested, H))]
    else:
        budget = 2 << 20                               # ~2 MiB bf16 strip / buffer
        max_rows = max(1, budget // max(1, 2 * Cin * W))
        cand = [d for d in divisors if d <= max_rows]
    good = [d for d in cand if (d * W) % 128 == 0]
    if good:
        return max(good)
    return H


def segmenthead_forward(x_nchw, params, scale_factor=None, eps=1e-5,
                        tile_rows=None):
    """Runs segmenthead.forward. x_nchw: (B, Cin, H, W)."""
    g1, be1, m1, v1 = params['bn1']
    g2, be2, m2, v2 = params['bn2']
    w1 = params['conv1_w']          # (Cmid, Cin, 3, 3)
    w2 = params['conv2_w']          # (Cout, Cmid, 1, 1)
    cb2 = params['conv2_b']         # (Cout,)

    B, Cin, H, W = x_nchw.shape
    Cmid, Cout = w1.shape[0], w2.shape[0]

    # Fold BN (eval mode) into per-channel scale / shift (f32).
    s1 = (g1 / jnp.sqrt(v1 + eps)).astype(jnp.float32)
    o1 = (be1 - m1 * s1).astype(jnp.float32)
    s2 = (g2 / jnp.sqrt(v2 + eps)).astype(jnp.float32)
    o2 = (be2 - m2 * s2).astype(jnp.float32)

    # bf16 MXU weight operands; conv1 OIHW -> (Cmid, 9*Cin) in (dy, dx, cin)
    # column order to match the in-kernel im2col.
    w1k = jnp.transpose(w1, (0, 2, 3, 1)).reshape(Cmid, 9 * Cin).astype(jnp.bfloat16)
    w2m = w2[:, :, 0, 0].astype(jnp.bfloat16)                 # (Cout, Cmid)

    TH = _pick_tile_rows(H, W, Cin, tile_rows)
    nH = H // TH

    # Row tiles with a baked-in 2-row halo, bf16 (halves input HBM bytes).
    # TODO(synk): replace this wrapper-side halo gather (one extra HBM copy of
    # x) with an Element-indexed halo BlockSpec reading x directly.
    xh = jnp.pad(x_nchw.astype(jnp.float32), ((0, 0), (0, 0), (1, 1), (0, 0)))
    tiles = jnp.stack(
        [xh[:, :, r * TH:r * TH + TH + 2, :] for r in range(nH)],
        axis=1).astype(jnp.bfloat16)                          # (B, nH, Cin, TH+2, W)

    flops = 2 * B * H * W * (9 * Cin * Cmid + Cmid * Cout)
    bytes_accessed = (tiles.size * 2 + B * Cout * H * W * 4
                      + w1k.size * 2 + w2m.size * 2
                      + 4 * (2 * Cin + 2 * Cmid + Cout))

    out_flat = pl.pallas_call(
        _seghead_kernel,
        out_shape=jax.ShapeDtypeStruct((B, Cout, H * W), jnp.float32),
        grid_spec=pltpu.PrefetchScalarGridSpec(
            num_scalar_prefetch=0,
            grid=(B, nH),
            in_specs=[
                pl.BlockSpec((None, None, Cin, TH + 2, W),
                             lambda b, r: (b, r, 0, 0, 0)),
                pl.BlockSpec((Cin, 1), lambda b, r: (0, 0)),
                pl.BlockSpec((Cin, 1), lambda b, r: (0, 0)),
                pl.BlockSpec((Cmid, 9 * Cin), lambda b, r: (0, 0)),
                pl.BlockSpec((Cmid, 1), lambda b, r: (0, 0)),
                pl.BlockSpec((Cmid, 1), lambda b, r: (0, 0)),
                pl.BlockSpec((Cout, Cmid), lambda b, r: (0, 0)),
                pl.BlockSpec((Cout, 1), lambda b, r: (0, 0)),
            ],
            out_specs=pl.BlockSpec((None, Cout, TH * W), lambda b, r: (b, 0, r)),
            scratch_shapes=[pltpu.VMEM((Cin, TH + 2, W + 2), jnp.bfloat16)],
        ),
        compiler_params=pltpu.CompilerParams(
            dimension_semantics=("parallel", "parallel"),
            vmem_limit_bytes=32 * 1024 * 1024),
        cost_estimate=pl.CostEstimate(flops=flops, transcendentals=0,
                                      bytes_accessed=bytes_accessed),
    )(tiles, s1.reshape(Cin, 1), o1.reshape(Cin, 1), w1k,
      s2.reshape(Cmid, 1), o2.reshape(Cmid, 1), w2m,
      cb2.astype(jnp.float32).reshape(Cout, 1))

    out_nchw = out_flat.reshape(B, Cout, H, W)

    if scale_factor is not None:
        # F.interpolate(mode='bilinear', align_corners=False) == half-pixel
        # bilinear, matched by jax.image.resize 'bilinear' (glue, not hot path).
        out_nchw = jax.image.resize(
            out_nchw, (B, Cout, H * scale_factor, W * scale_factor),
            method='bilinear')
    return out_nchw


def _reference_forward(x, params, eps=1e-5):
    """Pure-JAX (XLA conv) reference for correctness checking."""
    g1, be1, m1, v1 = params['bn1']
    g2, be2, m2, v2 = params['bn2']

    def bn(t, g, b, m, v):
        sh = (1, -1, 1, 1)
        return (t - m.reshape(sh)) / jnp.sqrt(v.reshape(sh) + eps) \
            * g.reshape(sh) + b.reshape(sh)

    y = jax.nn.relu(bn(x, g1, be1, m1, v1))
    y = jax.lax.conv_general_dilated(
        y, params['conv1_w'], (1, 1), 'SAME',
        dimension_numbers=('NCHW', 'OIHW', 'NCHW'))
    y = jax.nn.relu(bn(y, g2, be2, m2, v2))
    y = jax.lax.conv_general_dilated(
        y, params['conv2_w'], (1, 1), 'SAME',
        dimension_numbers=('NCHW', 'OIHW', 'NCHW'))
    return y + params['conv2_b'].reshape(1, -1, 1, 1)


if __name__ == "__main__":
    key = jax.random.PRNGKey(0)
    B, Cin, H, W = 2, 4, 16, 16        # inplanes=4
    Cmid, Cout = 8, 4                  # interplanes=8, outplanes=4
    ks = jax.random.split(key, 12)

    x = jax.random.normal(ks[0], (B, Cin, H, W), jnp.float32)
    params = {
        'bn1': (1.0 + 0.1 * jax.random.normal(ks[1], (Cin,), jnp.float32),
                0.1 * jax.random.normal(ks[2], (Cin,), jnp.float32),
                0.1 * jax.random.normal(ks[3], (Cin,), jnp.float32),
                jax.nn.softplus(jax.random.normal(ks[4], (Cin,), jnp.float32)) + 0.5),
        'conv1_w': 0.2 * jax.random.normal(ks[5], (Cmid, Cin, 3, 3), jnp.float32),
        'bn2': (1.0 + 0.1 * jax.random.normal(ks[6], (Cmid,), jnp.float32),
                0.1 * jax.random.normal(ks[7], (Cmid,), jnp.float32),
                0.1 * jax.random.normal(ks[8], (Cmid,), jnp.float32),
                jax.nn.softplus(jax.random.normal(ks[9], (Cmid,), jnp.float32)) + 0.5),
        'conv2_w': 0.2 * jax.random.normal(ks[10], (Cout, Cmid, 1, 1), jnp.float32),
        'conv2_b': 0.1 * jax.random.normal(ks[11], (Cout,), jnp.float32),
    }

    # tile_rows=8 -> grid (B, 2): exercises the spatial-tiling + halo path.
    out = segmenthead_forward(x, params, scale_factor=None, tile_rows=8)
    out = jax.block_until_ready(out)

    ref = jax.block_until_ready(_reference_forward(x, params))
    assert out.shape == (B, Cout, H, W), out.shape
    # bf16 MXU operands with f32 accumulation -> loosened tolerance (inference).
    assert jnp.allclose(out, ref, atol=5e-2, rtol=5e-2), \
        float(jnp.max(jnp.abs(out - ref)))

    out_up = segmenthead_forward(x, params, scale_factor=2, tile_rows=8)
    out_up = jax.block_until_ready(out_up)
    assert out_up.shape == (B, Cout, 2 * H, 2 * W), out_up.shape

    print("KERNEL_OK")
</pallas_src>

<mosaic_0001>
module attributes {stable_mosaic.version = 11 : i64} {
  func.func @_seghead_kernel(%arg0: i32, %arg1: i32, %arg2: memref<1x1x4x10x16xbf16, #tpu.memory_space<vmem>>, %arg3: memref<4x1xf32, #tpu.memory_space<vmem>>, %arg4: memref<4x1xf32, #tpu.memory_space<vmem>>, %arg5: memref<8x36xbf16, #tpu.memory_space<vmem>>, %arg6: memref<8x1xf32, #tpu.memory_space<vmem>>, %arg7: memref<8x1xf32, #tpu.memory_space<vmem>>, %arg8: memref<4x8xbf16, #tpu.memory_space<vmem>>, %arg9: memref<4x1xf32, #tpu.memory_space<vmem>>, %arg10: memref<1x4x128xf32, #tpu.memory_space<vmem>>, %arg11: memref<4x10x18xbf16, #tpu.memory_space<vmem>>) attributes {dimension_semantics = [#tpu.dimension_semantics<parallel>, #tpu.dimension_semantics<parallel>], iteration_bounds = array<i64: 2, 2>, scalar_prefetch = 0 : i64, scratch_operands = 1 : i64, tpu.core_type = #tpu.core_type<tc>, window_params = [{transform_indices = @transform_0, window_bounds = array<i64: 1, 1, 4, 10, 16>}, {pipeline_mode = #tpu.pipeline_mode<synchronous>, transform_indices = @transform_1, window_bounds = array<i64: 4, 1>}, {pipeline_mode = #tpu.pipeline_mode<synchronous>, transform_indices = @transform_2, window_bounds = array<i64: 4, 1>}, {pipeline_mode = #tpu.pipeline_mode<synchronous>, transform_indices = @transform_3, window_bounds = array<i64: 8, 36>}, {pipeline_mode = #tpu.pipeline_mode<synchronous>, transform_indices = @transform_4, window_bounds = array<i64: 8, 1>}, {pipeline_mode = #tpu.pipeline_mode<synchronous>, transform_indices = @transform_5, window_bounds = array<i64: 8, 1>}, {pipeline_mode = #tpu.pipeline_mode<synchronous>, transform_indices = @transform_6, window_bounds = array<i64: 4, 8>}, {pipeline_mode = #tpu.pipeline_mode<synchronous>, transform_indices = @transform_7, window_bounds = array<i64: 4, 1>}, {transform_indices = @transform_8, window_bounds = array<i64: 1, 4, 128>}]} {
    %c0 = arith.constant 0 : index
    %c0_0 = arith.constant 0 : index
    %c0_1 = arith.constant 0 : index
    %c0_2 = arith.constant 0 : index
    %c0_3 = arith.constant 0 : index
    %0 = vector.load %arg2[%c0, %c0_0, %c0_1, %c0_2, %c0_3] : memref<1x1x4x10x16xbf16, #tpu.memory_space<vmem>>, vector<1x1x4x10x16xbf16>
    %1 = vector.shape_cast %0 : vector<1x1x4x10x16xbf16> to vector<4x10x16xbf16>
    %2 = arith.extf %1 : vector<4x10x16xbf16> to vector<4x10x16xf32>
    %c0_4 = arith.constant 0 : index
    %c0_5 = arith.constant 0 : index
    %3 = vector.load %arg3[%c0_4, %c0_5] : memref<4x1xf32, #tpu.memory_space<vmem>>, vector<4x1xf32>
    %4 = vector.shape_cast %3 : vector<4x1xf32> to vector<4x1x1xf32>
    %c0_6 = arith.constant 0 : index
    %c0_7 = arith.constant 0 : index
    %5 = vector.load %arg4[%c0_6, %c0_7] : memref<4x1xf32, #tpu.memory_space<vmem>>, vector<4x1xf32>
    %6 = vector.shape_cast %5 : vector<4x1xf32> to vector<4x1x1xf32>
    %7 = vector.broadcast %4 : vector<4x1x1xf32> to vector<4x10x16xf32>
    %8 = arith.mulf %2, %7 : vector<4x10x16xf32>
    %9 = vector.broadcast %6 : vector<4x1x1xf32> to vector<4x10x16xf32>
    %10 = arith.addf %8, %9 : vector<4x10x16xf32>
    %cst = arith.constant 0.000000e+00 : f32
    %11 = vector.broadcast %cst : f32 to vector<4x10x16xf32>
    %12 = arith.maximumf %10, %11 : vector<4x10x16xf32>
    %13 = arith.truncf %12 : vector<4x10x16xf32> to vector<4x10x16xbf16>
    %cst_8 = arith.constant 0.000000e+00 : bf16
    %14 = vector.broadcast %cst_8 : bf16 to vector<4x10x1xbf16>
    %c0_9 = arith.constant 0 : index
    %c0_10 = arith.constant 0 : index
    %c0_11 = arith.constant 0 : index
    %15 = vector.load %arg11[%c0_9, %c0_10, %c0_11] : memref<4x10x18xbf16, #tpu.memory_space<vmem>>, vector<4x10x1xbf16>
    tpu.vector_store %arg11[%c0_9, %c0_10, %c0_11], %14 {strides = array<i32>} : memref<4x10x18xbf16, #tpu.memory_space<vmem>>, vector<4x10x1xbf16>,
    %c0_12 = arith.constant 0 : index
    %c0_13 = arith.constant 0 : index
    %c17 = arith.constant 17 : index
    %16 = vector.load %arg11[%c0_12, %c0_13, %c17] : memref<4x10x18xbf16, #tpu.memory_space<vmem>>, vector<4x10x1xbf16>
    tpu.vector_store %arg11[%c0_12, %c0_13, %c17], %14 {strides = array<i32>} : memref<4x10x18xbf16, #tpu.memory_space<vmem>>, vector<4x10x1xbf16>,
    %c0_14 = arith.constant 0 : index
    %c0_15 = arith.constant 0 : index
    %c1 = arith.constant 1 : index
    %17 = vector.load %arg11[%c0_14, %c0_15, %c1] : memref<4x10x18xbf16, #tpu.memory_space<vmem>>, vector<4x10x16xbf16>
    tpu.vector_store %arg11[%c0_14, %c0_15, %c1], %13 {strides = array<i32>} : memref<4x10x18xbf16, #tpu.memory_space<vmem>>, vector<4x10x16xbf16>,
    %c0_i32 = arith.constant 0 : i32
    %18 = arith.cmpi eq, %arg1, %c0_i32 : i32
    %19 = arith.extui %18 : i1 to i32
    %c0_i32_16 = arith.constant 0 : i32
    %20 = arith.cmpi ne, %19, %c0_i32_16 : i32
    scf.if %20 {
      %cst_60 = arith.constant 0.000000e+00 : bf16
      %62 = vector.broadcast %cst_60 : bf16 to vector<4x1x18xbf16>
      %c0_61 = arith.constant 0 : index
      %c0_62 = arith.constant 0 : index
      %c0_63 = arith.constant 0 : index
      %63 = vector.load %arg11[%c0_61, %c0_62, %c0_63] : memref<4x10x18xbf16, #tpu.memory_space<vmem>>, vector<4x1x18xbf16>
      tpu.vector_store %arg11[%c0_61, %c0_62, %c0_63], %62 {strides = array<i32>} : memref<4x10x18xbf16, #tpu.memory_space<vmem>>, vector<4x1x18xbf16>,
    } else {
    }
    %c1_i32 = arith.constant 1 : i32
    %21 = arith.cmpi eq, %arg1, %c1_i32 : i32
    %22 = arith.extui %21 : i1 to i32
    %c0_i32_17 = arith.constant 0 : i32
    %23 = arith.cmpi ne, %22, %c0_i32_17 : i32
    scf.if %23 {
      %cst_60 = arith.constant 0.000000e+00 : bf16
      %62 = vector.broadcast %cst_60 : bf16 to vector<4x1x18xbf16>
      %c0_61 = arith.constant 0 : index
      %c9 = arith.constant 9 : index
      %c0_62 = arith.constant 0 : index
      %63 = vector.load %arg11[%c0_61, %c9, %c0_62] : memref<4x10x18xbf16, #tpu.memory_space<vmem>>, vector<4x1x18xbf16>
      tpu.vector_store %arg11[%c0_61, %c9, %c0_62], %62 {strides = array<i32>} : memref<4x10x18xbf16, #tpu.memory_space<vmem>>, vector<4x1x18xbf16>,
    } else {
    }
    %c0_18 = arith.constant 0 : index
    %c0_19 = arith.constant 0 : index
    %c0_20 = arith.constant 0 : index
    %24 = vector.load %arg11[%c0_18, %c0_19, %c0_20] : memref<4x10x18xbf16, #tpu.memory_space<vmem>>, vector<4x8x16xbf16>
    %25 = vector.shape_cast %24 : vector<4x8x16xbf16> to vector<4x128xbf16>
    %c0_21 = arith.constant 0 : index
    %c0_22 = arith.constant 0 : index
    %c1_23 = arith.constant 1 : index
    %26 = vector.load %arg11[%c0_21, %c0_22, %c1_23] : memref<4x10x18xbf16, #tpu.memory_space<vmem>>, vector<4x8x16xbf16>
    %27 = vector.shape_cast %26 : vector<4x8x16xbf16> to vector<4x128xbf16>
    %c0_24 = arith.constant 0 : index
    %c0_25 = arith.constant 0 : index
    %c2 = arith.constant 2 : index
    %28 = vector.load %arg11[%c0_24, %c0_25, %c2] : memref<4x10x18xbf16, #tpu.memory_space<vmem>>, vector<4x8x16xbf16>
    %29 = vector.shape_cast %28 : vector<4x8x16xbf16> to vector<4x128xbf16>
    %c0_26 = arith.constant 0 : index
    %c1_27 = arith.constant 1 : index
    %c0_28 = arith.constant 0 : index
    %30 = vector.load %arg11[%c0_26, %c1_27, %c0_28] : memref<4x10x18xbf16, #tpu.memory_space<vmem>>, vector<4x8x16xbf16>
    %31 = vector.shape_cast %30 : vector<4x8x16xbf16> to vector<4x128xbf16>
    %c0_29 = arith.constant 0 : index
    %c1_30 = arith.constant 1 : index
    %c1_31 = arith.constant 1 : index
    %32 = vector.load %arg11[%c0_29, %c1_30, %c1_31] : memref<4x10x18xbf16, #tpu.memory_space<vmem>>, vector<4x8x16xbf16>
    %33 = vector.shape_cast %32 : vector<4x8x16xbf16> to vector<4x128xbf16>
    %c0_32 = arith.constant 0 : index
    %c1_33 = arith.constant 1 : index
    %c2_34 = arith.constant 2 : index
    %34 = vector.load %arg11[%c0_32, %c1_33, %c2_34] : memref<4x10x18xbf16, #tpu.memory_space<vmem>>, vector<4x8x16xbf16>
    %35 = vector.shape_cast %34 : vector<4x8x16xbf16> to vector<4x128xbf16>
    %c0_35 = arith.constant 0 : index
    %c2_36 = arith.constant 2 : index
    %c0_37 = arith.constant 0 : index
    %36 = vector.load %arg11[%c0_35, %c2_36, %c0_37] : memref<4x10x18xbf16, #tpu.memory_space<vmem>>, vector<4x8x16xbf16>
    %37 = vector.shape_cast %36 : vector<4x8x16xbf16> to vector<4x128xbf16>
    %c0_38 = arith.constant 0 : index
    %c2_39 = arith.constant 2 : index
    %c1_40 = arith.constant 1 : index
    %38 = vector.load %arg11[%c0_38, %c2_39, %c1_40] : memref<4x10x18xbf16, #tpu.memory_space<vmem>>, vector<4x8x16xbf16>
    %39 = vector.shape_cast %38 : vector<4x8x16xbf16> to vector<4x128xbf16>
    %c0_41 = arith.constant 0 : index
    %c2_42 = arith.constant 2 : index
    %c2_43 = arith.constant 2 : index
    %40 = vector.load %arg11[%c0_41, %c2_42, %c2_43] : memref<4x10x18xbf16, #tpu.memory_space<vmem>>, vector<4x8x16xbf16>
    %41 = vector.shape_cast %40 : vector<4x8x16xbf16> to vector<4x128xbf16>
    %42 = tpu.concatenate %25, %27, %29, %31, %33, %35, %37, %39, %41 in 0 : vector<4x128xbf16>, vector<4x128xbf16>, vector<4x128xbf16>, vector<4x128xbf16>, vector<4x128xbf16>, vector<4x128xbf16>, vector<4x128xbf16>, vector<4x128xbf16>, vector<4x128xbf16> -> vector<36x128xbf16>
    %c0_44 = arith.constant 0 : index
    %c0_45 = arith.constant 0 : index
    %43 = vector.load %arg5[%c0_44, %c0_45] : memref<8x36xbf16, #tpu.memory_space<vmem>>, vector<8x36xbf16>
    %cst_46 = arith.constant dense<0.000000e+00> : vector<8x128xf32>
    %44 = tpu.matmul %43, %42, %cst_46 {dimension_numbers = #tpu.dot_dimension_numbers<[1], [0], [0], [1], [0, 0, 1, 1], [], []>} : vector<8x36xbf16>, vector<36x128xbf16>, vector<8x128xf32> -> vector<8x128xf32>
    %c0_47 = arith.constant 0 : index
    %c0_48 = arith.constant 0 : index
    %45 = vector.load %arg6[%c0_47, %c0_48] : memref<8x1xf32, #tpu.memory_space<vmem>>, vector<8x1xf32>
    %46 = vector.broadcast %45 : vector<8x1xf32> to vector<8x128xf32>
    %47 = arith.mulf %44, %46 : vector<8x128xf32>
    %c0_49 = arith.constant 0 : index
    %c0_50 = arith.constant 0 : index
    %48 = vector.load %arg7[%c0_49, %c0_50] : memref<8x1xf32, #tpu.memory_space<vmem>>, vector<8x1xf32>
    %49 = vector.broadcast %48 : vector<8x1xf32> to vector<8x128xf32>
    %50 = arith.addf %47, %49 : vector<8x128xf32>
    %cst_51 = arith.constant 0.000000e+00 : f32
    %51 = vector.broadcast %cst_51 : f32 to vector<8x128xf32>
    %52 = arith.maximumf %50, %51 : vector<8x128xf32>
    %c0_52 = arith.constant 0 : index
    %c0_53 = arith.constant 0 : index
    %53 = vector.load %arg8[%c0_52, %c0_53] : memref<4x8xbf16, #tpu.memory_space<vmem>>, vector<4x8xbf16>
    %54 = arith.truncf %52 : vector<8x128xf32> to vector<8x128xbf16>
    %cst_54 = arith.constant dense<0.000000e+00> : vector<4x128xf32>
    %55 = tpu.matmul %53, %54, %cst_54 {dimension_numbers = #tpu.dot_dimension_numbers<[1], [0], [0], [1], [0, 0, 1, 1], [], []>} : vector<4x8xbf16>, vector<8x128xbf16>, vector<4x128xf32> -> vector<4x128xf32>
    %c0_55 = arith.constant 0 : index
    %c0_56 = arith.constant 0 : index
    %56 = vector.load %arg9[%c0_55, %c0_56] : memref<4x1xf32, #tpu.memory_space<vmem>>, vector<4x1xf32>
    %57 = vector.broadcast %56 : vector<4x1xf32> to vector<4x128xf32>
    %58 = arith.addf %55, %57 : vector<4x128xf32>
    %c0_57 = arith.constant 0 : index
    %c0_58 = arith.constant 0 : index
    %c0_59 = arith.constant 0 : index
    %59 = vector.load %arg10[%c0_57, %c0_58, %c0_59] : memref<1x4x128xf32, #tpu.memory_space<vmem>>, vector<1x4x128xf32>
    %60 = vector.shape_cast %59 : vector<1x4x128xf32> to vector<4x128xf32>
    %61 = vector.shape_cast %58 : vector<4x128xf32> to vector<1x4x128xf32>
    tpu.vector_store %arg10[%c0_57, %c0_58, %c0_59], %61 {strides = array<i32>} : memref<1x4x128xf32, #tpu.memory_space<vmem>>, vector<1x4x128xf32>,
    return
  }
  func.func @transform_0(%arg0: i32, %arg1: i32) -> (i32, i32, i32, i32, i32) {
    %c0_i32 = arith.constant 0 : i32
    %c0_i32_0 = arith.constant 0 : i32
    %c0_i32_1 = arith.constant 0 : i32
    %c0_i32_2 = arith.constant 0 : i32
    return %arg0, %arg1, %c0_i32, %c0_i32_0, %c0_i32_1 : i32, i32, i32, i32, i32
  }
  func.func @transform_1(%arg0: i32, %arg1: i32) -> (i32, i32) {
    %c0_i32 = arith.constant 0 : i32
    %c0_i32_0 = arith.constant 0 : i32
    %c0_i32_1 = arith.constant 0 : i32
    return %c0_i32, %c0_i32_0 : i32, i32
  }
  func.func @transform_2(%arg0: i32, %arg1: i32) -> (i32, i32) {
    %c0_i32 = arith.constant 0 : i32
    %c0_i32_0 = arith.constant 0 : i32
    %c0_i32_1 = arith.constant 0 : i32
    return %c0_i32, %c0_i32_0 : i32, i32
  }
  func.func @transform_3(%arg0: i32, %arg1: i32) -> (i32, i32) {
    %c0_i32 = arith.constant 0 : i32
    %c0_i32_0 = arith.constant 0 : i32
    %c0_i32_1 = arith.constant 0 : i32
    return %c0_i32, %c0_i32_0 : i32, i32
  }
  func.func @transform_4(%arg0: i32, %arg1: i32) -> (i32, i32) {
    %c0_i32 = arith.constant 0 : i32
    %c0_i32_0 = arith.constant 0 : i32
    %c0_i32_1 = arith.constant 0 : i32
    return %c0_i32, %c0_i32_0 : i32, i32
  }
  func.func @transform_5(%arg0: i32, %arg1: i32) -> (i32, i32) {
    %c0_i32 = arith.constant 0 : i32
    %c0_i32_0 = arith.constant 0 : i32
    %c0_i32_1 = arith.constant 0 : i32
    return %c0_i32, %c0_i32_0 : i32, i32
  }
  func.func @transform_6(%arg0: i32, %arg1: i32) -> (i32, i32) {
    %c0_i32 = arith.constant 0 : i32
    %c0_i32_0 = arith.constant 0 : i32
    %c0_i32_1 = arith.constant 0 : i32
    return %c0_i32, %c0_i32_0 : i32, i32
  }
  func.func @transform_7(%arg0: i32, %arg1: i32) -> (i32, i32) {
    %c0_i32 = arith.constant 0 : i32
    %c0_i32_0 = arith.constant 0 : i32
    %c0_i32_1 = arith.constant 0 : i32
    return %c0_i32, %c0_i32_0 : i32, i32
  }
  func.func @transform_8(%arg0: i32, %arg1: i32) -> (i32, i32, i32) {
    %c0_i32 = arith.constant 0 : i32
    %c0_i32_0 = arith.constant 0 : i32
    return %arg0, %c0_i32, %arg1 : i32, i32, i32
  }
}

</mosaic_0001>

<bundles_post_ra>
// kernel: tpu_custom_call.1
= control target key start
LH: loop header
LB: loop body
LE: loop exit
PB: predicated region body
PF: predicated region fallthrough
CT: control target
= control target key end

     0   :  { %s3285_s0 = inlined_call_operand.vmem [shape: bf16[2,2,4,10,16], index: 0, kind: input, shape index: {}]   ;;  %s3286_s1 = inlined_call_operand.vmem [shape: f32[4,1], index: 1, kind: input, shape index: {}]   ;;  %s3287_s2 = inlined_call_operand.vmem [shape: f32[4,1], index: 2, kind: input, shape index: {}]   ;;  %s3288_s3 = inlined_call_operand.vmem [shape: bf16[8,36], index: 3, kind: input, shape index: {}]   ;;  %s3289_s4 = inlined_call_operand.vmem [shape: f32[8,1], index: 4, kind: input, shape index: {}]   ;;  %s3290_s5 = inlined_call_operand.vmem [shape: f32[8,1], index: 5, kind: input, shape index: {}]   ;;  %s3291_s6 = inlined_call_operand.vmem [shape: bf16[4,8], index: 6, kind: input, shape index: {}]   ;;  %s3292_s7 = inlined_call_operand.vmem [shape: f32[4,1], index: 7, kind: input, shape index: {}]   ;;  %s3293_s8 = inlined_call_operand.hbm [shape: f32[2,4,256], index: 8, kind: output, shape index: {}]  }
   0x1   :  { %3295 = sst [smem:[#allocation6_spill]] %s3285_s0 }
   0x2   :  { %3296 = sst [smem:[#allocation7_spill]] %s3286_s1 }
   0x3   :  { %13 = vsyncpa [#allocation4], 0 }
   0x4   :  { %15 = vsyncpa [#allocation4 + $0x1], 0  ;;  %s2578_s27 = smov 0   ;;  %s2580_s28 = smov 0  }
   0x5   :  { %s2582_s29 = smov 0   ;;  %s2584_s30 = smov 0  }
   0x6   :  { %s2586_s9 = smov 0   ;;  %s2588_s10 = smov 0  }
   0x7   :  { %s2590_s11 = smov 0   ;;  %s2592_s12 = smov 0  }
   0x8 LB: > { %s2168_s13 = sadd.s32 4294967295, %s2514_s12   ;;  %s2169_s14 = sadd.s32 4294967294, %s2514_s12   ;;  %s2514_s12 = sphi %s2592_s12, %s21_s12   ;;  %s2510_s11 = sphi %s2590_s11, %s3314_s11   ;;  %s2506_s10 = sphi %s2588_s10, %s3313_s10   ;;  %s2502_s9 = sphi %s2586_s9, %s3312_s9   ;;  %s2498_s30 = sphi %s2584_s30, %s3311_s30   ;;  %s2494_s29 = sphi %s2582_s29, %s3310_s29   ;;  %s2490_s28 = sphi %s2580_s28, %s3309_s28   ;;  %s2486_s27 = sphi %s2578_s27, %s3308_s27  }
   0x9   : > { %s30_s15 = sadd.s32 1, %s2506_s10  ;;  %s33_s16 = sadd.s32 1, %s2510_s11 }
   0xa   : > { %p31_p0 = scmp.ge.s32.totalorder %s30_s15, 2  ;;  %p227_p1 = scmp.ne.s32.totalorder %s2494_s29, %s2490_s28 }
   0xb   : > { %p228_p2 = scmp.eq.s32.totalorder %s2168_s13, 3  ;;  %p233_p5 = scmp.ne.s32.totalorder %s2490_s28, %s2486_s27 }
   0xc   : > { %s3316_s15 = smov (%p31_p0, %s30_s15), 0  ;;  %s3318_s16 = smov (!%p31_p0, %s33_s16), %s2510_s11 }
   0xd   : > { %s213_s17 = ssub.s32 %s2506_s10, %s3316_s15  ;;  %p2629_p3 = por %p228_p2, %p227_p1 }
   0xe   : > { %p35_p4 = scmp.ge.s32.totalorder %s3318_s16, 2  ;;  %p234_p6 = scmp.eq.s32.totalorder %s2169_s14, 3 }
   0xf   : > { %p2172_p7 = scmp.ge.s32.totalorder %s2514_s12, 1  ;;  %p285_p9 = scmp.lt.s32.totalorder %s2514_s12, 5 }
  0x10   : > { %s3320_s16 = smov (%p35_p4, %s3318_s16), 0  ;;  %p2638_p8 = por %p234_p6, %p233_p5 }
  0x11   : > { %s212_s20 = ssub.s32 %s2510_s11, %s3320_s16  ;;  %s217_s21 = sadd.s32 1, %s2494_s29 }
  0x12   : > { %s214_s22 = sor.u32 %s213_s17, %s212_s20  ;;  %p286_p10 = pnand %p2172_p7, %p285_p9 }
  0x13   : > { %p215_p11 = scmp.eq.s32.totalorder %s214_s22, 0  ;;  %v362_v0 = vlaneseq (!%p286_p10)  ;;  %v2516_v1 = vmov (!%p286_p10), 0   ;;  %v2517_v2 = vmov (!%p286_p10), 1966171168   ;;  %s3299_s1 = sld [smem:[#allocation7_spill]] (!%p286_p10)  ;;  %vm495_vm0 = vcmask (!%p286_p10), 0  }
  0x14   : > { %289 = sbr.rel (%p286_p10) target bundleno = 1113 (0x459), region = 52  ;;  %2417 = vset.pattern.permute.xlu1 (!%p286_p10), %v2516_v1  ;;  %2416 = vset.pattern.permute.xlu0 (!%p286_p10), %v2516_v1  ;;  %v360_v3 = vunpack.c.l.s4 (!%p286_p10), %v2517_v2  ;;  %v2178_v4 = vld.sshfl [vmem:[%s3287_s2] sm:$0x33 pattern:$0x75316420] (!%p286_p10)  ;;  %vm505_vm1 = vcmask (!%p286_p10), 139400  }
  0x15   : > { %s2647_s23 = scalar_select %p215_p11, %s2494_s29, %s217_s21  }
  0x16   : > { %v2654_v5 = vshrl.u32 (!%p286_p10), %v362_v0, 7  ;;  %v361_v7 = vunpack.c.0.s8 (!%p286_p10), %v360_v3  ;;  %v384_v8 = vcombine.high (!%p286_p10), %v2178_v4, %v2178_v4  ;;  %496 = vst.msk [vmem:[#allocation2 + $0x4] sm:$0x1] (!%p286_p10), %vm495_vm0, %v2516_v1  ;;  %498 = vst.msk [vmem:[#allocation2 + $0xc] sm:$0x1] (!%p286_p10), %vm495_vm0, %v2516_v1  ;;  %p323_p12 = scmp.lt.s32.totalorder (!%p286_p10), %s2502_s9, 1 }
  0x17   : > { %500 = vst.msk [vmem:[#allocation2 + $0x14] sm:$0x1] (!%p286_p10), %vm495_vm0, %v2516_v1  ;;  %502 = vst.msk [vmem:[#allocation2 + $0x1c] sm:$0x1] (!%p286_p10), %vm495_vm0, %v2516_v1  ;;  %p325_p13 = scmp.lt.s32.totalorder (!%p286_p10), %s2498_s30, 1  ;;  %s3300_s0 = sld [smem:[#allocation6_spill]] (!%p286_p10) }
  0x18   : > { %v364_v10 = vsub.s32 (!%p286_p10), %v361_v7, %v2654_v5  ;;  %v403_v11 = vsub.s32 (!%p286_p10), 0, %v2654_v5  ;;  %506 = vst.msk [vmem:[#allocation2 + $0x4] sm:$0x1] (!%p286_p10), %vm505_vm1, %v2516_v1  ;;  %508 = vst.msk [vmem:[#allocation2 + $0xc] sm:$0x1] (!%p286_p10), %vm505_vm1, %v2516_v1  ;;  %vm493_vm2 = vcmask (!%p286_p10), 3072  }
  0x19   : > { %v2177_v6 = vld.sshfl [vmem:[%s3299_s1] sm:$0x33 pattern:$0x75316420] (!%p286_p10)  ;;  %510 = vst.msk [vmem:[#allocation2 + $0x14] sm:$0x1] (!%p286_p10), %vm505_vm1, %v2516_v1 }
  0x1a   : > { %v358_v9 = vcombine.high (!%p286_p10), %v2177_v6, %v2177_v6  ;;  %v398_v12 = vrot.slane (!%p286_p10), %v384_v8, %v364_v10  ;;  %v365_v13 = vrot.slane (!%p286_p10), %v2177_v6, %v364_v10  ;;  %v391_v18 = vrot.slane (!%p286_p10), %v2178_v4, %v364_v10  ;;  %512 = vst.msk [vmem:[#allocation2 + $0x1c] sm:$0x1] (!%p286_p10), %vm505_vm1, %v2516_v1  ;;  %p2187_p0 = scmp.ne.s32.totalorder (!%p286_p10), %s2498_s30, 0 }
  0x1b   : > { %s324_s14 = scalar_select %p323_p12, %s2502_s9, 1  ;;  %494 = vst.msk [vmem:[#allocation2] sm:$0xf] %vm493_vm2, %v2516_v1  ;;  %vm503_vm3 = vcmask 142472   ;;  %497 = vst.msk [vmem:[#allocation2 + $0x8] sm:$0xf] %vm493_vm2, %v2516_v1 }
  0x1c   : > { %v372_v14 = vrot.slane %v358_v9, %v364_v10  ;;  %v448_v15 = vrot.slane %v398_v12, %v403_v11  ;;  %v404_v16 = vrot.slane %v365_v13, %v403_v11  ;;  %v373_v17 = vcombine.high %v365_v13, %v365_v13  ;;  %s326_s17 = scalar_select %p325_p13, %s2498_s30, 1  ;;  %499 = vst.msk [vmem:[#allocation2 + $0x10] sm:$0xf] %vm493_vm2, %v2516_v1 }
  0x1d   : > { %v400_v22 = vcombine.high %v398_v12, %v398_v12  ;;  %v444_v23 = vrot.slane %v391_v18, %v403_v11  ;;  %v399_v25 = vcombine.high %v391_v18, %v391_v18  ;;  %s2175_s21 = sshll.u32 %s324_s14, 4  ;;  %501 = vst.msk [vmem:[#allocation2 + $0x18] sm:$0xf] %vm493_vm2, %v2516_v1  ;;  %s3294_s14 = sand.u32 1, %s2490_s28   ;;  %vm559_vm4 = vcmask 131080  }
  0x1e   : > { %462 = vperm.xlu1 %2417, %v448_v15   ;;  %418 = vperm.xlu0 %2416, %v404_v16   ;;  %v412_v19 = vrot.slane %v373_v17, %v403_v11  ;;  %v408_v20 = vrot.slane %v372_v14, %v403_v11  ;;  %v374_v21 = vcombine.high %v372_v14, %v372_v14  ;;  %s2174_s20 = sshll.u32 %s326_s17, 3  ;;  %s2687_s17 = sshll.u32 %s3294_s14, 2  ;;  %vm557_vm5 = vcmask 134152  }
  0x1f   : > { %v452_v26 = vrot.slane %v399_v25, %v403_v11  ;;  %v456_v27 = vrot.slane %v400_v22, %v403_v11  ;;  %s329_s22 = sadd.s32 %s2175_s21, %s2174_s20  ;;  %504 = vst.msk [vmem:[#allocation2] sm:$0xf] %vm503_vm3, %v2516_v1  ;;  %507 = vst.msk [vmem:[#allocation2 + $0x8] sm:$0xf] %vm503_vm3, %v2516_v1  ;;  %s2518_s20 = smov 1   ;;  %vm571_vm6 = vcmask (!%p2187_p0), 139264  }
  0x20   : > { %v416_v24 = vrot.slane %v374_v21, %v403_v11  ;;  %s2176_s24 = sshll.u32 %s329_s22, 2  ;;  %509 = vst.msk [vmem:[#allocation2 + $0x10] sm:$0xf] %vm503_vm3, %v2516_v1  ;;  %511 = vst.msk [vmem:[#allocation2 + $0x18] sm:$0xf] %vm503_vm3, %v2516_v1 }
  0x21   : > { %s331_s13 = scalar_lea.vmem %s3300_s0, %s2176_s24  ;;  %vm572_vm7 = vsmask.f32 (!%p2187_p0), 256 }
  0x22   : > { %426 = vperm.xlu1 %2417, %v412_v19   ;;  %422 = vperm.xlu0 %2416, %v408_v20   ;;  %v335_v28 = vld [vmem:[%s331_s13 + $0x8] ss:$16 sps:$4 sm:$0xff]   ;;  %v336_v29 = vld [vmem:[%s331_s13 + $0xc] sm:$0x1]  ;;  %v333_v32 = vld [vmem:[%s331_s13] ss:$16 sps:$4 sm:$0xff]  }
  0x23   : > { %v334_v33 = vld [vmem:[%s331_s13 + $0x4] sm:$0x1]  ;;  %v343_v34 = vunpack.c.l.bf16 %v335_v28  ;;  %v344_v35 = vunpack.c.l.bf16 %v336_v29  ;;  %v341_v36 = vunpack.c.l.bf16 %v333_v32  ;;  %v338_v39 = vld [vmem:[%s331_s13 + $0x14] sm:$0x1]  ;;  %v345_v45 = vunpack.c.h.bf16 %v333_v32  ;;  %v340_v47 = vld [vmem:[%s331_s13 + $0x1c] sm:$0x1] }
  0x24   : > { %v342_v37 = vunpack.c.l.bf16 %v334_v33  ;;  %v346_v46 = vunpack.c.l.bf16 %v338_v39  ;;  %v347_v54 = vunpack.c.h.bf16 %v335_v28  ;;  %v348_v55 = vunpack.c.l.bf16 %v340_v47  ;;  %vm573_vm8 = vmand (!%p2187_p0), %vm571_vm6, %vm572_vm7 }
  0x26   : > { %458 = vperm.xlu0 %2416, %v444_v23   ;;  %430 = vperm.xlu1 %2417, %v416_v24  }
  0x2a   : > { %466 = vperm.xlu0 %2416, %v452_v26   ;;  %470 = vperm.xlu1 %2417, %v456_v27  }
  0x9d   : > { %v463_v30 = vpop.permute.xlu1 %462  ;;  %v419_v31 = vpop.permute.xlu0 %418 }
  0x9e   : > { %v433_v43 = vmul.f32 %v419_v31, %v341_v36  ;;  %v434_v44 = vmul.f32 %v419_v31, %v342_v37 }
  0xa1   : > { %v427_v38 = vpop.permute.xlu1 %426  ;;  %v423_v40 = vpop.permute.xlu0 %422 }
  0xa2   : > { %v435_v41 = vmul.f32 %v423_v40, %v343_v34  ;;  %v436_v42 = vmul.f32 %v423_v40, %v344_v35  ;;  %v437_v56 = vmul.f32 %v427_v38, %v345_v45  ;;  %v438_v57 = vmul.f32 %v427_v38, %v346_v46 }
  0xa4   : > { %v475_v48 = vadd.f32 %v463_v30, %v435_v41  ;;  %v476_v49 = vadd.f32 %v463_v30, %v436_v42 }
  0xa5   : > { %v459_v50 = vpop.permute.xlu0 %458  ;;  %v431_v51 = vpop.permute.xlu1 %430 }
  0xa6   : > { %v473_v52 = vadd.f32 %v459_v50, %v433_v43  ;;  %v474_v53 = vadd.f32 %v459_v50, %v434_v44  ;;  %v483_v60 = vmax.f32 %v475_v48, 0.0  ;;  %v484_v61 = vmax.f32 %v476_v49, 0.0 }
  0xa7   : > { %v439_v6 = vmul.f32 %v431_v51, %v347_v54  ;;  %v440_v7 = vmul.f32 %v431_v51, %v348_v55 }
  0xa8   : > { %v481_v58 = vmax.f32 %v473_v52, 0.0  ;;  %v482_v59 = vmax.f32 %v474_v53, 0.0  ;;  %v2266_v8 = vpack.c.bf16 %v484_v61, %v484_v61  ;;  %v2265_v9 = vpack.c.bf16 %v483_v60, %v483_v60 }
  0xa9   : > { %v467_v62 = vpop.permute.xlu0 %466  ;;  %v471_v4 = vpop.permute.xlu1 %470 }
  0xaa   : > { %v2263_v63 = vpack.c.bf16 %v481_v58, %v481_v58  ;;  %v2264_v0 = vpack.c.bf16 %v482_v59, %v482_v59  ;;  %v477_v2 = vadd.f32 %v467_v62, %v437_v56  ;;  %v478_v3 = vadd.f32 %v467_v62, %v438_v57 }
  0xab   : > { %v479_v12 = vadd.f32 %v471_v4, %v439_v6  ;;  %v480_v13 = vadd.f32 %v471_v4, %v440_v7 }
  0xac   : > { %535 = vrot.lane.b32.xlu1 %v2264_v0, %s2518_s20  ;;  %533 = vrot.lane.b32.xlu0 %v2263_v63, %s2518_s20  ;;  %v485_v10 = vmax.f32 %v477_v2, 0.0  ;;  %v486_v11 = vmax.f32 %v478_v3, 0.0 }
  0xad   : > { %v487_v16 = vmax.f32 %v479_v12, 0.0  ;;  %v488_v17 = vmax.f32 %v480_v13, 0.0 }
  0xae   : > { %v2267_v14 = vpack.c.bf16 %v485_v10, %v485_v10  ;;  %v2268_v15 = vpack.c.bf16 %v486_v11, %v486_v11 }
  0xaf   : > { %v2269_v18 = vpack.c.bf16 %v487_v16, %v487_v16  ;;  %v2270_v19 = vpack.c.bf16 %v488_v17, %v488_v17 }
  0xb0   : > { %539 = vrot.lane.b32.xlu1 %v2266_v8, %s2518_s20  ;;  %537 = vrot.lane.b32.xlu0 %v2265_v9, %s2518_s20 }
  0xb4   : > { %543 = vrot.lane.b32.xlu1 %v2268_v15, %s2518_s20  ;;  %541 = vrot.lane.b32.xlu0 %v2267_v14, %s2518_s20 }
  0xb8   : > { %547 = vrot.lane.b32.xlu1 %v2270_v19, %s2518_s20  ;;  %545 = vrot.lane.b32.xlu0 %v2269_v18, %s2518_s20 }
 0x11e   : > { %v536_v20 = vpop.permute.xlu1 %535  ;;  %v534_v21 = vpop.permute.xlu0 %533 }
 0x11f   : > { %560 = vst.msk [vmem:[#allocation2 + $0x4] sm:$0x1] %vm559_vm4, %v536_v20 }
 0x120   : > { %558 = vst.msk [vmem:[#allocation2] sm:$0xf] %vm557_vm5, %v534_v21 }
 0x122   : > { %v540_v22 = vpop.permute.xlu1 %539  ;;  %v538_v23 = vpop.permute.xlu0 %537 }
 0x123   : > { %562 = vst.msk [vmem:[#allocation2 + $0xc] sm:$0x1] %vm559_vm4, %v540_v22 }
 0x124   : > { %561 = vst.msk [vmem:[#allocation2 + $0x8] sm:$0xf] %vm557_vm5, %v538_v23 }
 0x126   : > { %v544_v24 = vpop.permute.xlu1 %543  ;;  %v542_v25 = vpop.permute.xlu0 %541  ;;  %570 = sbr.rel (%p2187_p0) target bundleno = 310 (0x136), region = 56 }
 0x127   : > { %564 = vst.msk [vmem:[#allocation2 + $0x14] sm:$0x1] %vm559_vm4, %v544_v24  ;;  %v574_v28 = vld [vmem:[#allocation2] sm:$0x1] (!%p2187_p0) }
 0x128   : > { %563 = vst.msk [vmem:[#allocation2 + $0x10] sm:$0xf] %vm557_vm5, %v542_v25  ;;  %v575_v31 = vsel (!%p2187_p0), %vm573_vm8, 0, %v574_v28 }
 0x129   : > { %576 = vst [vmem:[#allocation2] sm:$0x1] (!%p2187_p0), %v575_v31 }
 0x12a   : > { %v548_v26 = vpop.permute.xlu1 %547  ;;  %v546_v27 = vpop.permute.xlu0 %545 }
 0x12b   : > { %566 = vst.msk [vmem:[#allocation2 + $0x1c] sm:$0x1] %vm559_vm4, %v548_v26  ;;  %v577_v29 = vld [vmem:[#allocation2 + $0x8] sm:$0x1] (!%p2187_p0) }
 0x12c   : > { %565 = vst.msk [vmem:[#allocation2 + $0x18] sm:$0xf] %vm557_vm5, %v546_v27  ;;  %v578_v32 = vsel (!%p2187_p0), %vm573_vm8, 0, %v577_v29 }
 0x12d   : > { %579 = vst [vmem:[#allocation2 + $0x8] sm:$0x1] %v578_v32 }
 0x12f   : > { %v580_v30 = vld [vmem:[#allocation2 + $0x10] sm:$0x1] }
 0x130   : > { %v581_v33 = vsel %vm573_vm8, 0, %v580_v30 }
 0x131   : > { %582 = vst [vmem:[#allocation2 + $0x10] sm:$0x1] %v581_v33 }
 0x133   : > { %v583_v34 = vld [vmem:[#allocation2 + $0x18] sm:$0x1] }
 0x134   : > { %v584_v35 = vsel %vm573_vm8, 0, %v583_v34 }
 0x135   : > { %585 = vst [vmem:[#allocation2 + $0x18] sm:$0x1] %v584_v35 }
 0x136 PF: > { %p2188_p1 = scmp.ne.s32.totalorder %s2498_s30, 1 }
 0x137   : > { %vm590_vm9 = vcmask (!%p2188_p1), 139264   ;;  %vm591_vm10 = vsmask.f32 (!%p2188_p1), 7938  ;;  %v593_v36 = vld [vmem:[#allocation2 + $0x4] sm:$0x1] (!%p2188_p1) }
 0x138   : > { %589 = sbr.rel (%p2188_p1) target bundleno = 319 (0x13f), region = 60  ;;  %vm592_vm11 = vmand (!%p2188_p1), %vm590_vm9, %vm591_vm10  ;;  %v596_v37 = vld [vmem:[#allocation2 + $0xc] sm:$0x1] (!%p2188_p1)  ;;  %v599_v38 = vld [vmem:[#allocation2 + $0x14] sm:$0x1] (!%p2188_p1) }
 0x139   : > { %v594_v39 = vsel (!%p2188_p1), %vm592_vm11, 0, %v593_v36  ;;  %v597_v40 = vsel (!%p2188_p1), %vm592_vm11, 0, %v596_v37  ;;  %v600_v41 = vsel (!%p2188_p1), %vm592_vm11, 0, %v599_v38 }
 0x13a   : > { %595 = vst [vmem:[#allocation2 + $0x4] sm:$0x1] (!%p2188_p1), %v594_v39  ;;  %598 = vst [vmem:[#allocation2 + $0xc] sm:$0x1] (!%p2188_p1), %v597_v40 }
 0x13b   : > { %v602_v42 = vld [vmem:[#allocation2 + $0x1c] sm:$0x1] (!%p2188_p1)  ;;  %601 = vst [vmem:[#allocation2 + $0x14] sm:$0x1] (!%p2188_p1), %v600_v41 }
 0x13c   : > { %v603_v43 = vsel (!%p2188_p1), %vm592_vm11, 0, %v602_v42 }
 0x13d   : > { %604 = vst [vmem:[#allocation2 + $0x1c] sm:$0x1] (!%p2188_p1), %v603_v43 }
 0x13f PF: > { %v2700_v44 = vld [vmem:[#allocation2 + $0x10] sm:$0xf]  ;;  %v2702_v45 = vld [vmem:[#allocation2] sm:$0xf]  ;;  %2418 = vset.pattern.permute.xlu1 %v2516_v1  ;;  %2419 = vset.pattern.permute.xlu0 %v2516_v1  ;;  %s2519_s22 = smov 127   ;;  %s2520_s24 = smov 126  }
 0x140   : > { %754 = vrot.lane.b32.xlu1 %v2700_v44, %s2519_s22  ;;  %750 = vrot.lane.b32.xlu0 %v2702_v45, %s2519_s22  ;;  %v612_v46 = vshrl.u32 %v2702_v45, 16  ;;  %v2711_v47 = vld [vmem:[#allocation2 + $0x18] sm:$0xf]  ;;  %v2713_v48 = vld [vmem:[#allocation2 + $0x8] sm:$0xf]  ;;  %v618_v1 = vshrl.u32 %v2700_v44, 16 }
 0x141   : > { %v619_v49 = vshrl.u32 %v2711_v47, 16  ;;  %v613_v50 = vshrl.u32 %v2713_v48, 16  ;;  %v2717_v51 = vld [vmem:[#allocation2 + $0xc] sm:$0x1]  ;;  %v1047_v52 = vshll.u32 %v2713_v48, 16  ;;  %v1035_v56 = vshll.u32 %v2702_v45, 16 }
 0x142   : > { %v2723_v54 = vld [vmem:[#allocation2 + $0x4] sm:$0x1]  ;;  %v1034_v55 = vrot.slane %v612_v46, 4  ;;  %vm1030_vm12 = vsmask.f32 3328  ;;  %v1053_v58 = vshll.u32 %v2717_v51, 16 }
 0x143   : > { %v1046_v53 = vrot.slane %v613_v50, 4  ;;  %v1049_v57 = vrot.slane %v1047_v52, 5  ;;  %v1037_v59 = vrot.slane %v1035_v56, 5  ;;  %v1041_v60 = vshll.u32 %v2723_v54, 16  ;;  %v2739_v2 = vld [vmem:[#allocation2 + $0x14] sm:$0x1] }
 0x144   : > { %756 = vrot.lane.b32.xlu1 %v2711_v47, %s2519_s22  ;;  %752 = vrot.lane.b32.xlu0 %v2713_v48, %s2519_s22  ;;  %v2734_v61 = vld [vmem:[#allocation2 + $0x1c] sm:$0x1]  ;;  %v1070_v62 = vrot.slane %v619_v49, 4  ;;  %v1071_v63 = vshll.u32 %v2711_v47, 16  ;;  %vm1031_vm13 = vsmask.f32 7440 }
 0x145   : > { %v1050_v0 = vor.u32 %v1049_v57, %v1046_v53  ;;  %v1058_v3 = vrot.slane %v618_v1, 4  ;;  %v1059_v4 = vshll.u32 %v2700_v44, 16  ;;  %v1038_v6 = vor.u32 %v1037_v59, %v1034_v55  ;;  %vm2750_vm14 = vmor %vm1030_vm12, %vm1031_vm13  ;;  %v1488_v28 = vld [vmem:[#allocation2 + $0x8] sm:$0xe]  ;;  %v1487_v32 = vld [vmem:[#allocation2] sm:$0xe] }
 0x146   : > { %v1073_v7 = vrot.slane %v1071_v63, 5  ;;  %v1055_v9 = vrot.slane %v1053_v58, 5  ;;  %v1077_v10 = vshll.u32 %v2734_v61, 16  ;;  %v1043_v14 = vrot.slane %v1041_v60, 5  ;;  %v1490_v40 = vld [vmem:[#allocation2 + $0x18] sm:$0xe] }
 0x147   : > { %v1051_v8 = vrot.slane %v1050_v0, 4  ;;  %v1061_v11 = vrot.slane %v1059_v4, 5  ;;  %v1039_v13 = vrot.slane %v1038_v6, 4  ;;  %v1065_v16 = vshll.u32 %v2739_v2, 16  ;;  %v1489_v41 = vld [vmem:[#allocation2 + $0x10] sm:$0xe] }
 0x148   : > { %890 = vrot.lane.b32.xlu1 %v2713_v48, %s2520_s24  ;;  %888 = vrot.lane.b32.xlu0 %v2702_v45, %s2520_s24  ;;  %v1074_v15 = vor.u32 %v1073_v7, %v1070_v62  ;;  %v1079_v19 = vrot.slane %v1077_v10, 5  ;;  %v2521_v26 = vmov 1983009808   ;;  %vm1499_vm15 = vcmask 1042432   ;;  %s2523_s25 = smov 16   ;;  %s2524_s26 = smov 32  }
 0x149   : > { %v1062_v17 = vor.u32 %v1061_v11, %v1058_v3  ;;  %v1056_v18 = vsel %vm2750_vm14, %v1051_v8, %v1055_v9  ;;  %v1044_v20 = vsel %vm2750_vm14, %v1039_v13, %v1043_v14  ;;  %v1067_v23 = vrot.slane %v1065_v16, 5  ;;  %s2525_s13 = smov 48   ;;  %s2526_s20 = smov 64  }
 0x14a   : > { %v1075_v21 = vrot.slane %v1074_v15, 4  ;;  %v623_v27 = vunpack.c.l.s4 %v2521_v26  ;;  %vm1500_vm0 = vcmask 1046532   ;;  %v2232_v30 = vrot.slane %v1488_v28, 9  ;;  %s2529_s14 = smov 112  }
 0x14b   : > { %v1063_v22 = vrot.slane %v1062_v17, 4  ;;  %v1508_v31 = vrot.slane %v2717_v51, 5  ;;  %v1085_v33 = vshrl.u32 %v1056_v18, 16  ;;  %v1084_v34 = vshrl.u32 %v1044_v20, 16  ;;  %vm2774_vm1 = vmor %vm1499_vm15, %vm1500_vm0 }
 0x14c   : > { %894 = vrot.lane.b32.xlu1 %v2711_v47, %s2520_s24  ;;  %892 = vrot.lane.b32.xlu0 %v2700_v44, %s2520_s24  ;;  %v1080_v24 = vsel %vm2750_vm14, %v1075_v21, %v1079_v19  ;;  %v624_v29 = vunpack.c.0.s8 %v623_v27  ;;  %v2231_v38 = vrot.slane %v1487_v32, 9  ;;  %v1504_v39 = vrot.slane %v2723_v54, 5 }
 0x14d   : > { %v1068_v25 = vsel %vm2750_vm14, %v1063_v22, %v1067_v23  ;;  %v1091_v35 = vshrl.u32 %v1080_v24, 16  ;;  %v1086_v43 = vpack.i.b16 %v1085_v33, %v1084_v34  ;;  %v2784_v52 = vsel %vm2774_vm1, %v2232_v30, %v1508_v31 }
 0x14e   : > { %v1090_v36 = vshrl.u32 %v1068_v25, 16  ;;  %v2780_v42 = vsub.s32 %v624_v29, %v2654_v5  ;;  %v2234_v53 = vrot.slane %v1490_v40, 9  ;;  %v2522_v55 = vmov 1934713408  }
 0x14f   : > { %v640_v56 = vunpack.c.l.s4 %v2522_v55  ;;  %v614_v54 = vpack.i.b16 %v613_v50, %v612_v46  ;;  %v620_v57 = vpack.i.b16 %v619_v49, %v618_v1  ;;  %v1505_v58 = vsel %vm2774_vm1, %v2231_v38, %v1504_v39 }
 0x150   : > { %1351 = vrot.lane.b32.xlu1 %v1056_v18, %s2520_s24  ;;  %1349 = vrot.lane.b32.xlu0 %v1044_v20, %s2520_s24  ;;  %v1092_v51 = vpack.i.b16 %v1091_v35, %v1090_v36  ;;  %v1516_v59 = vrot.slane %v2734_v61, 5  ;;  %v2233_v60 = vrot.slane %v1489_v41, 9  ;;  %v1512_v62 = vrot.slane %v2739_v2, 5 }
 0x151   : > { %v611_v63 = vpack.i.b16 %v2713_v48, %v2702_v45  ;;  %v1083_v0 = vpack.i.b16 %v1056_v18, %v1044_v20  ;;  %v1089_v3 = vpack.i.b16 %v1080_v24, %v1068_v25  ;;  %v2803_v46 = vrot.slane %v1086_v43, %v2780_v42 }
 0x152   : > { %v2806_v50 = vrot.slane %v1092_v51, %v2780_v42  ;;  %v641_v49 = vunpack.c.0.s8 %v640_v56  ;;  %v662_v1 = vrot.slane %v614_v54, %v2780_v42  ;;  %v670_v61 = vrot.slane %v620_v57, %v2780_v42 }
 0x153   : > { %v617_v45 = vpack.i.b16 %v2711_v47, %v2700_v44  ;;  %v1517_v48 = vsel %vm2774_vm1, %v2234_v53, %v1516_v59  ;;  %v1513_v2 = vsel %vm2774_vm1, %v2233_v60, %v1512_v62  ;;  %v1100_v4 = vrot.slane %v1083_v0, %v2780_v42 }
 0x154   : > { %1355 = vrot.lane.b32.xlu1 %v1080_v24, %s2520_s24  ;;  %1353 = vrot.lane.b32.xlu0 %v1068_v25, %s2520_s24  ;;  %v1108_v6 = vrot.slane %v1089_v3, %v2780_v42  ;;  %v1143_v7 = vcombine.low %v2803_v46, %v2806_v50  ;;  %v628_v8 = vrot.slane %v611_v63, %v2780_v42  ;;  %v1522_v10 = vshrl.u32 %v2784_v52, 16 }
 0x155   : > { %v2827_v44 = vsub.s32 %v641_v49, %v2654_v5  ;;  %v671_v47 = vcombine.low %v662_v1, %v670_v61  ;;  %v636_v9 = vrot.slane %v617_v45, %v2780_v42  ;;  %v1521_v11 = vshrl.u32 %v1505_v58, 16 }
 0x156   : > { %v1528_v12 = vshrl.u32 %v1517_v48, 16  ;;  %v1527_v13 = vshrl.u32 %v1513_v2, 16  ;;  %v1109_v14 = vcombine.low %v1100_v4, %v1108_v6  ;;  %v1520_v23 = vpack.i.b16 %v2784_v52, %v1505_v58 }
 0x157   : > { %v1151_v15 = vrot.slane %v1143_v7, %v2827_v44  ;;  %v679_v16 = vrot.slane %v671_v47, %v2827_v44  ;;  %v637_v5 = vcombine.low %v628_v8, %v636_v9  ;;  %v1523_v17 = vpack.i.b16 %v1522_v10, %v1521_v11 }
 0x158   : > { %1213 = vrot.lane.b32.xlu1 %v1056_v18, %s2519_s22  ;;  %1211 = vrot.lane.b32.xlu0 %v1044_v20, %s2519_s22  ;;  %v1529_v18 = vpack.i.b16 %v1528_v12, %v1527_v13  ;;  %v2837_v19 = vrot.slane %v1109_v14, %v2827_v44  ;;  %v638_v30 = vcombine.high %v628_v8, %v636_v9  ;;  %vm724_vm2 = vcmask 130048  }
 0x159   : > { %v2210_v20 = vcombine.low %v1151_v15, %v1151_v15  ;;  %v2189_v21 = vcombine.low %v679_v16, %v679_v16  ;;  %v2842_v22 = vrot.slane %v637_v5, %v2827_v44  ;;  %v1571_v26 = vrot.slane %v1523_v17, %v2780_v42 }
 0x15a   : > { %v1579_v27 = vrot.slane %v1529_v18, %v2780_v42  ;;  %v2283_v28 = vcombine.high %v2837_v19, %v2837_v19  ;;  %v1537_v31 = vrot.slane %v1520_v23, %v2780_v42  ;;  %v2284_v33 = vcombine.high %v1151_v15, %v1151_v15 }
 0x15b   : > { %v2271_v29 = vcombine.high %v2842_v22, %v2842_v22  ;;  %v672_v34 = vcombine.high %v662_v1, %v670_v61  ;;  %v652_v36 = vrot.slane %v638_v30, %v2827_v44  ;;  %v2272_v37 = vcombine.high %v679_v16, %v679_v16 }
 0x15c   : > { %1217 = vrot.lane.b32.xlu1 %v1080_v24, %s2519_s22  ;;  %1215 = vrot.lane.b32.xlu0 %v1068_v25, %s2519_s22  ;;  %v1526_v24 = vpack.i.b16 %v1517_v48, %v1513_v2  ;;  %v1110_v25 = vcombine.high %v1100_v4, %v1108_v6  ;;  %v1580_v38 = vcombine.low %v1571_v26, %v1579_v27  ;;  %vm728_vm3 = vcmask 261120  }
 0x15d   : > { %v686_v39 = vrot.slane %v672_v34, %v2827_v44  ;;  %v2192_v43 = vcombine.low %v652_v36, %v652_v36  ;;  %v2273_v59 = vcombine.high %v652_v36, %v652_v36  ;;  %vm731_vm4 = vcmask 392192  }
 0x15e   : > { %v1545_v32 = vrot.slane %v1526_v24, %v2780_v42  ;;  %v1124_v35 = vrot.slane %v1110_v25, %v2827_v44  ;;  %v1588_v51 = vrot.slane %v1580_v38, %v2827_v44  ;;  %vm734_vm5 = vcmask 523264  }
 0x15f   : > { %v2193_v55 = vcombine.low %v686_v39, %v686_v39  ;;  %v2274_v0 = vcombine.high %v686_v39, %v686_v39  ;;  %vm737_vm6 = vcmask 654336   ;;  %vm2531_vm7 = vmmov 0  }
 0x160   : > { %1650 = vrot.lane.b32.xlu1 %v2784_v52, %s2519_s22  ;;  %1648 = vrot.lane.b32.xlu0 %v1505_v58, %s2519_s22  ;;  %v2213_v40 = vcombine.low %v1124_v35, %v1124_v35  ;;  %v1546_v41 = vcombine.low %v1537_v31, %v1545_v32  ;;  %v2235_v56 = vcombine.low %v1588_v51, %v1588_v51  ;;  %vm740_vm8 = vcmask 785408  }
 0x161   : > { %v2296_v60 = vcombine.high %v1588_v51, %v1588_v51  ;;  %v1547_v62 = vcombine.high %v1537_v31, %v1545_v32  ;;  %v2285_v63 = vcombine.high %v1124_v35, %v1124_v35  ;;  %vm743_vm9 = vcmask 916480  }
 0x162   : > { %v2866_v53 = vrot.slane %v1546_v41, %v2827_v44  ;;  %vm1936_vm10 = vcmask 1041408   ;;  %vm1939_vm11 = vcmask 1043456   ;;  %vm1942_vm12 = vcmask 1045504  }
 0x163   : > { %v2880_v3 = vrot.slane %v1547_v62, %v2827_v44  ;;  %vm1954_vm13 = vcmask 293888   ;;  %vm2023_vm14 = vcmask 64512  }
 0x164   : > { %1654 = vrot.lane.b32.xlu1 %v1517_v48, %s2519_s22  ;;  %1652 = vrot.lane.b32.xlu0 %v1513_v2, %s2519_s22  ;;  %s2527_s22 = smov 80   ;;  %v2295_v57 = vcombine.high %v2866_v53, %v2866_v53 }
 0x165   : > { %v2238_v49 = vcombine.low %v2880_v3, %v2880_v3 }
 0x168   : > { %1786 = vrot.lane.b32.xlu0 %v1505_v58, %s2520_s24  ;;  %1788 = vrot.lane.b32.xlu1 %v2784_v52, %s2520_s24  ;;  %v1144_v52 = vcombine.high %v2803_v46, %v2806_v50  ;;  %v1581_v46 = vcombine.high %v1571_v26, %v1579_v27 }
 0x16a   : > { %v1158_v54 = vrot.slane %v1144_v52, %v2827_v44  ;;  %v2887_v1 = vrot.slane %v1581_v46, %v2827_v44 }
 0x16c   : > { %1790 = vrot.lane.b32.xlu0 %v1513_v2, %s2520_s24  ;;  %1792 = vrot.lane.b32.xlu1 %v1517_v48, %s2520_s24  ;;  %v2214_v58 = vcombine.low %v1158_v54, %v1158_v54  ;;  %s2528_s24 = smov 96   ;;  %v2286_v50 = vcombine.high %v1158_v54, %v1158_v54  ;;  %v2239_v61 = vcombine.low %v2887_v1, %v2887_v1 }
 0x170   : > { %1164 = vrot.lane.b32.xlu0 %v2210_v20, %s2523_s25  ;;  %692 = vrot.lane.b32.xlu1 %v2189_v21, %s2523_s25 }
 0x174   : > { %1169 = vrot.lane.b32.xlu0 %v2283_v28, %s2524_s26  ;;  %697 = vrot.lane.b32.xlu1 %v2271_v29, %s2524_s26 }
 0x178   : > { %1174 = vrot.lane.b32.xlu0 %v2284_v33, %s2525_s13  ;;  %702 = vrot.lane.b32.xlu1 %v2272_v37, %s2525_s13 }
 0x17c   : > { %707 = vrot.lane.b32.xlu0 %v2192_v43, %s2526_s20  ;;  %1179 = vrot.lane.b32.xlu1 %v2213_v40, %s2526_s20 }
 0x180   : > { %712 = vrot.lane.b32.xlu0 %v2193_v55, %s2527_s22  ;;  %1601 = vrot.lane.b32.xlu1 %v2235_v56, %s2523_s25 }
 0x184   : > { %1606 = vrot.lane.b32.xlu0 %v2295_v57, %s2524_s26  ;;  %1184 = vrot.lane.b32.xlu1 %v2214_v58, %s2527_s22 }
 0x188   : > { %717 = vrot.lane.b32.xlu0 %v2273_v59, %s2528_s24  ;;  %1611 = vrot.lane.b32.xlu1 %v2296_v60, %s2525_s13 }
 0x18c   : > { %1189 = vrot.lane.b32.xlu0 %v2285_v63, %s2528_s24  ;;  %722 = vrot.lane.b32.xlu1 %v2274_v0, %s2529_s14 }
 0x190   : > { %1194 = vrot.lane.b32.xlu0 %v2286_v50, %s2529_s14  ;;  %1616 = vrot.lane.b32.xlu1 %v2238_v49, %s2526_s20 }
 0x194   : > { %1621 = vrot.lane.b32.xlu1 %v2239_v61, %s2527_s22 }
 0x1b2   : > { %v755_v45 = vpop.permute.xlu1 %754  ;;  %v751_v48 = vpop.permute.xlu0 %750 }
 0x1b3   : > { %v767_v9 = vshrl.u32 %v755_v45, 16  ;;  %v761_v10 = vshrl.u32 %v751_v48, 16 }
 0x1b6   : > { %v757_v2 = vpop.permute.xlu1 %756  ;;  %v753_v4 = vpop.permute.xlu0 %752 }
 0x1b7   : > { %v766_v6 = vpack.i.b16 %v757_v2, %v755_v45  ;;  %v768_v7 = vshrl.u32 %v757_v2, 16  ;;  %v760_v8 = vpack.i.b16 %v753_v4, %v751_v48  ;;  %v762_v47 = vshrl.u32 %v753_v4, 16 }
 0x1b9   : > { %v785_v11 = vrot.slane %v766_v6, %v2780_v42  ;;  %v777_v12 = vrot.slane %v760_v8, %v2780_v42  ;;  %v769_v13 = vpack.i.b16 %v768_v7, %v767_v9  ;;  %v763_v14 = vpack.i.b16 %v762_v47, %v761_v10 }
 0x1ba   : > { %v891_v15 = vpop.permute.xlu1 %890  ;;  %v889_v16 = vpop.permute.xlu0 %888 }
 0x1bb   : > { %v786_v5 = vcombine.low %v777_v12, %v785_v11  ;;  %v787_v17 = vcombine.high %v777_v12, %v785_v11  ;;  %v900_v18 = vshrl.u32 %v891_v15, 16  ;;  %v898_v20 = vpack.i.b16 %v891_v15, %v889_v16 }
 0x1bc   : > { %v899_v21 = vshrl.u32 %v889_v16, 16  ;;  %v819_v25 = vrot.slane %v769_v13, %v2780_v42  ;;  %v811_v26 = vrot.slane %v763_v14, %v2780_v42 }
 0x1bd   : > { %v801_v23 = vrot.slane %v787_v17, %v2827_v44  ;;  %v2898_v24 = vrot.slane %v786_v5, %v2827_v44  ;;  %v915_v35 = vrot.slane %v898_v20, %v2780_v42 }
 0x1be   : > { %v895_v27 = vpop.permute.xlu1 %894  ;;  %v893_v28 = vpop.permute.xlu0 %892  ;;  %v901_v34 = vpack.i.b16 %v900_v18, %v899_v21  ;;  %v820_v40 = vcombine.low %v811_v26, %v819_v25  ;;  %v821_v61 = vcombine.high %v811_v26, %v819_v25 }
 0x1bf   : > { %v906_v29 = vshrl.u32 %v895_v27, 16  ;;  %v904_v30 = vpack.i.b16 %v895_v27, %v893_v28  ;;  %v905_v31 = vshrl.u32 %v893_v28, 16  ;;  %v2199_v32 = vcombine.low %v801_v23, %v801_v23 }
 0x1c0   : > { %v2275_v33 = vcombine.high %v2898_v24, %v2898_v24  ;;  %v949_v52 = vrot.slane %v901_v34, %v2780_v42  ;;  %v828_v60 = vrot.slane %v820_v40, %v2827_v44  ;;  %v2277_v4 = vcombine.high %v801_v23, %v801_v23 }
 0x1c1   : > { %v907_v36 = vpack.i.b16 %v906_v29, %v905_v31  ;;  %v923_v37 = vrot.slane %v904_v30, %v2780_v42  ;;  %856 = vrot.lane.b32.xlu0 %v2199_v32, %s2526_s20  ;;  %v835_v6 = vrot.slane %v821_v61, %v2827_v44  ;;  %v2530_v27 = vmov 0.0  }
 0x1c2   : > { %846 = vrot.lane.b32.xlu1 %v2275_v33, %s2524_s26  ;;  %v2908_v38 = vpop.permute.xlu1 %1351  ;;  %v2910_v39 = vpop.permute.xlu0 %1349  ;;  %v2196_v46 = vcombine.low %v828_v60, %v828_v60  ;;  %v2276_v10 = vcombine.high %v828_v60, %v828_v60  ;;  %2313 = vmatprep.subr.bf16.mxu0 %v2530_v27 }
 0x1c3   : > { %v924_v41 = vcombine.low %v915_v35, %v923_v37  ;;  %v925_v43 = vcombine.high %v915_v35, %v923_v37  ;;  %v957_v51 = vrot.slane %v907_v36, %v2780_v42  ;;  %v2200_v15 = vcombine.low %v835_v6, %v835_v6  ;;  %2323 = vmatprep.subr.bf16.mxu1 %v2530_v27 }
 0x1c4   : > { %v1359_v28 = vpack.i.b16 %v2908_v38, %v2910_v39  ;;  %v2278_v31 = vcombine.high %v835_v6, %v835_v6  ;;  %v1361_v36 = vshrl.u32 %v2908_v38, 16  ;;  %v1360_v37 = vshrl.u32 %v2910_v39, 16  ;;  %2319 = vmatprep.mubr.msk.bf16.mxu0 %vm2531_vm7, %v2530_v27  ;;  %2325 = vmatprep.mubr.msk.bf16.mxu1 %vm2531_vm7, %v2530_v27 }
 0x1c5   : > { %v939_v55 = vrot.slane %v925_v43, %v2827_v44  ;;  %v2916_v56 = vrot.slane %v924_v41, %v2827_v44  ;;  %v958_v58 = vcombine.low %v949_v52, %v957_v51  ;;  %v959_v7 = vcombine.high %v949_v52, %v957_v51 }
 0x1c6   : > { %v2918_v54 = vpop.permute.xlu1 %1355  ;;  %v2920_v57 = vpop.permute.xlu0 %1353  ;;  %v1376_v39 = vrot.slane %v1359_v28, %v2780_v42 }
 0x1c7   : > { %v2281_v59 = vcombine.high %v939_v55, %v939_v55  ;;  %v2279_v62 = vcombine.high %v2916_v56, %v2916_v56  ;;  %v966_v50 = vrot.slane %v958_v58, %v2827_v44  ;;  %v2206_v49 = vcombine.low %v939_v55, %v939_v55 }
 0x1c8   : > { %v1365_v16 = vpack.i.b16 %v2918_v54, %v2920_v57  ;;  %v973_v20 = vrot.slane %v959_v7, %v2827_v44  ;;  %v1367_v29 = vshrl.u32 %v2918_v54, 16  ;;  %v1366_v30 = vshrl.u32 %v2920_v57, 16 }
 0x1c9   : > { %1004 = vrot.lane.b32.xlu0 %v2281_v59, %s2528_s24  ;;  %984 = vrot.lane.b32.xlu1 %v2279_v62, %s2524_s26  ;;  %v2203_v2 = vcombine.low %v966_v50, %v966_v50  ;;  %v2280_v12 = vcombine.high %v966_v50, %v966_v50 }
 0x1ca   : > { %v2927_v63 = vpop.permute.xlu1 %1213  ;;  %v2929_v0 = vpop.permute.xlu0 %1211  ;;  %v1384_v40 = vrot.slane %v1365_v16, %v2780_v42  ;;  %v2207_v41 = vcombine.low %v973_v20, %v973_v20  ;;  %v1368_v57 = vpack.i.b16 %v1367_v29, %v1366_v30  ;;  %v2282_v58 = vcombine.high %v973_v20, %v973_v20 }
 0x1cb   : > { %v1221_v5 = vpack.i.b16 %v2927_v63, %v2929_v0 }
 0x1cc   : > { %v1385_v50 = vcombine.low %v1376_v39, %v1384_v40 }
 0x1cd   : > { %841 = vrot.lane.b32.xlu0 %v2196_v46, %s2523_s25  ;;  %994 = vrot.lane.b32.xlu1 %v2206_v49, %s2526_s20  ;;  %v1238_v52 = vrot.slane %v1221_v5, %v2780_v42  ;;  %v1362_v46 = vpack.i.b16 %v1361_v36, %v1360_v37 }
 0x1ce   : > { %v2934_v45 = vpop.permute.xlu1 %1217  ;;  %v2936_v48 = vpop.permute.xlu0 %1215 }
 0x1cf   : > { %v1227_v13 = vpack.i.b16 %v2934_v45, %v2936_v48 }
 0x1d1   : > { %979 = vrot.lane.b32.xlu0 %v2203_v2, %s2523_s25  ;;  %866 = vrot.lane.b32.xlu1 %v2277_v4, %s2528_s24  ;;  %v1246_v32 = vrot.slane %v1227_v13, %v2780_v42  ;;  %v1229_v2 = vshrl.u32 %v2934_v45, 16  ;;  %v1228_v4 = vshrl.u32 %v2936_v48, 16  ;;  %v1410_v45 = vrot.slane %v1362_v46, %v2780_v42 }
 0x1d2   : > { %v1651_v8 = vpop.permute.xlu1 %1650  ;;  %v1649_v47 = vpop.permute.xlu0 %1648 }
 0x1d3   : > { %v1660_v9 = vshrl.u32 %v1651_v8, 16  ;;  %v1659_v11 = vshrl.u32 %v1649_v47, 16  ;;  %v1658_v14 = vpack.i.b16 %v1651_v8, %v1649_v47  ;;  %v1247_v59 = vcombine.low %v1238_v52, %v1246_v32 }
 0x1d4   : > { %v1418_v8 = vrot.slane %v1368_v57, %v2780_v42  ;;  %v1223_v47 = vshrl.u32 %v2927_v63, 16 }
 0x1d5   : > { %851 = vrot.lane.b32.xlu0 %v2276_v10, %s2525_s13  ;;  %989 = vrot.lane.b32.xlu1 %v2280_v12, %s2525_s13  ;;  %v1661_v21 = vpack.i.b16 %v1660_v9, %v1659_v11  ;;  %v2958_v33 = vrot.slane %v1658_v14, %v2780_v42  ;;  %v1222_v9 = vshrl.u32 %v2929_v0, 16  ;;  %v1248_v10 = vcombine.high %v1238_v52, %v1246_v32 }
 0x1d6   : > { %v1655_v17 = vpop.permute.xlu1 %1654  ;;  %v1653_v18 = vpop.permute.xlu0 %1652  ;;  %v3003_v12 = vrot.slane %v1247_v59, %v2827_v44  ;;  %v1386_v14 = vcombine.high %v1376_v39, %v1384_v40  ;;  %v3012_v0 = vrot.slane %v1385_v50, %v2827_v44  ;;  %v1419_v16 = vcombine.low %v1410_v45, %v1418_v8 }
 0x1d7   : > { %v1666_v23 = vshrl.u32 %v1655_v17, 16  ;;  %v1664_v25 = vpack.i.b16 %v1655_v17, %v1653_v18  ;;  %v1665_v26 = vshrl.u32 %v1653_v18, 16  ;;  %v2974_v55 = vrot.slane %v1661_v21, %v2780_v42 }
 0x1d8   : > { %v1224_v5 = vpack.i.b16 %v1223_v47, %v1222_v9  ;;  %v2287_v17 = vcombine.high %v3003_v12, %v3003_v12  ;;  %v3018_v18 = vrot.slane %v1248_v10, %v2827_v44  ;;  %v1427_v30 = vrot.slane %v1419_v16, %v2827_v44 }
 0x1d9   : > { %v1667_v34 = vpack.i.b16 %v1666_v23, %v1665_v26  ;;  %v2961_v35 = vrot.slane %v1664_v25, %v2780_v42  ;;  %861 = vrot.lane.b32.xlu0 %v2200_v15, %s2527_s22  ;;  %871 = vrot.lane.b32.xlu1 %v2278_v31, %s2529_s14  ;;  %v1230_v15 = vpack.i.b16 %v1229_v2, %v1228_v4 }
 0x1da   : > { %v2968_v43 = vpop.permute.xlu0 %1786  ;;  %v2970_v51 = vpop.permute.xlu1 %1788  ;;  %v2291_v25 = vcombine.high %v3012_v0, %v3012_v0  ;;  %v1400_v26 = vrot.slane %v1386_v14, %v2827_v44  ;;  %v1272_v28 = vrot.slane %v1224_v5, %v2780_v42  ;;  %v2220_v29 = vcombine.low %v3018_v18, %v3018_v18 }
 0x1db   : > { %v1684_v54 = vcombine.low %v2958_v33, %v2961_v35  ;;  %v2979_v38 = vrot.slane %v1667_v34, %v2780_v42  ;;  %v1280_v23 = vrot.slane %v1230_v15, %v2780_v42  ;;  %v2224_v37 = vcombine.low %v1427_v30, %v1427_v30 }
 0x1dc   : > { %v2227_v36 = vcombine.low %v1400_v26, %v1400_v26  ;;  %v1420_v52 = vcombine.high %v1410_v45, %v1418_v8  ;;  %v1685_v46 = vcombine.high %v2958_v33, %v2961_v35  ;;  %v1797_v45 = vshrl.u32 %v2968_v43, 16 }
 0x1dd   : > { %v1718_v60 = vcombine.low %v2974_v55, %v2979_v38  ;;  %999 = vrot.lane.b32.xlu0 %v2207_v41, %s2527_s22  ;;  %v2986_v62 = vrot.slane %v1684_v54, %v2827_v44  ;;  %1009 = vrot.lane.b32.xlu1 %v2282_v58, %s2529_s14  ;;  %v1281_v34 = vcombine.low %v1272_v28, %v1280_v23  ;;  %v1798_v14 = vshrl.u32 %v2970_v51, 16 }
 0x1de   : > { %v2989_v49 = vpop.permute.xlu0 %1790  ;;  %v2991_v61 = vpop.permute.xlu1 %1792  ;;  %v2293_v54 = vcombine.high %v1400_v26, %v1400_v26  ;;  %v1282_v57 = vcombine.high %v1272_v28, %v1280_v23  ;;  %v2292_v58 = vcombine.high %v1427_v30, %v1427_v30  ;;  %v1434_v2 = vrot.slane %v1420_v52, %v2827_v44 }
 0x1df   : > { %v2299_v6 = vcombine.high %v2986_v62, %v2986_v62  ;;  %v1726_v7 = vrot.slane %v1718_v60, %v2827_v44  ;;  %v1289_v39 = vrot.slane %v1281_v34, %v2827_v44  ;;  %v1699_v35 = vrot.slane %v1685_v46, %v2827_v44 }
 0x1e0   : > { %v2228_v33 = vcombine.low %v1434_v2, %v1434_v2  ;;  %v1804_v16 = vshrl.u32 %v2991_v61, 16  ;;  %v1799_v23 = vpack.i.b16 %v1798_v14, %v1797_v45  ;;  %v2294_v26 = vcombine.high %v1434_v2, %v1434_v2 }
 0x1e1   : > { %1744 = vrot.lane.b32.xlu0 %v2299_v6, %s2524_s26  ;;  %v2242_v11 = vcombine.low %v1726_v7, %v1726_v7  ;;  %v2300_v63 = vcombine.high %v1726_v7, %v1726_v7  ;;  %v2217_v50 = vcombine.low %v1289_v39, %v1289_v39  ;;  %v2288_v6 = vcombine.high %v1289_v39, %v1289_v39 }
 0x1e2   : > { %v3006_v48 = vpop.permute.xlu0 %1164  ;;  %v3008_v13 = vpop.permute.xlu1 %692  ;;  %v1296_v7 = vrot.slane %v1282_v57, %v2827_v44  ;;  %v2245_v5 = vcombine.low %v1699_v35, %v1699_v35  ;;  %v2301_v52 = vcombine.high %v1699_v35, %v1699_v35 }
 0x1e3   : > { %1739 = vrot.lane.b32.xlu1 %v2242_v11, %s2523_s25  ;;  %v1719_v11 = vcombine.high %v2974_v55, %v2979_v38  ;;  %v1802_v55 = vpack.i.b16 %v2991_v61, %v2989_v49 }
 0x1e4   : > { %v2221_v10 = vcombine.low %v1296_v7, %v1296_v7  ;;  %v2290_v46 = vcombine.high %v1296_v7, %v1296_v7 }
 0x1e5   : > { %1749 = vrot.lane.b32.xlu0 %v2300_v63, %s2525_s13  ;;  %v1803_v63 = vshrl.u32 %v2989_v49, 16  ;;  %v1733_v28 = vrot.slane %v1719_v11, %v2827_v44  ;;  %v1821_v30 = vrot.slane %v1802_v55, %v2780_v42  ;;  %v1847_v49 = vrot.slane %v1799_v23, %v2780_v42  ;;  %v2007_v11 = vld [vmem:[%s3290_s5] sm:$0xff] }
 0x1e6   : > { %v3020_v20 = vpop.permute.xlu0 %1169  ;;  %v3022_v21 = vpop.permute.xlu1 %697 }
 0x1e7   : > { %1307 = vrot.lane.b32.xlu1 %v2287_v17, %s2524_s26  ;;  %v2246_v34 = vcombine.low %v1733_v28, %v1733_v28 }
 0x1e9   : > { %1445 = vrot.lane.b32.xlu0 %v2291_v25, %s2524_s26  ;;  %v1805_v25 = vpack.i.b16 %v1804_v16, %v1803_v63 }
 0x1ea   : > { %v3034_v31 = vpop.permute.xlu0 %1174  ;;  %v3036_v32 = vpop.permute.xlu1 %702 }
 0x1eb   : > { %1317 = vrot.lane.b32.xlu1 %v2220_v29, %s2526_s20  ;;  %v1855_v61 = vrot.slane %v1805_v25, %v2780_v42  ;;  %v727_v25 = vsel %vm724_vm2, %v2842_v22, %v3008_v13 }
 0x1ed   : > { %1455 = vrot.lane.b32.xlu0 %v2227_v36, %s2526_s20  ;;  %v1856_v39 = vcombine.low %v1847_v49, %v1855_v61 }
 0x1ee   : > { %v3040_v40 = vpop.permute.xlu0 %707  ;;  %v3042_v41 = vpop.permute.xlu1 %1179 }
 0x1ef   : > { %1440 = vrot.lane.b32.xlu1 %v2224_v37, %s2523_s25 }
 0x1f1   : > { %1465 = vrot.lane.b32.xlu0 %v2293_v54, %s2528_s24  ;;  %v2298_v54 = vcombine.high %v2887_v1, %v2887_v1  ;;  %v1864_v1 = vrot.slane %v1856_v39, %v2827_v44 }
 0x1f2   : > { %v3047_v59 = vpop.permute.xlu0 %712  ;;  %v1602_v60 = vpop.permute.xlu1 %1601 }
 0x1f3   : > { %1450 = vrot.lane.b32.xlu1 %v2292_v58, %s2525_s13  ;;  %v1635_v4 = vsel %vm724_vm2, %v2866_v53, %v1602_v60  ;;  %v2297_v53 = vcombine.high %v2880_v3, %v2880_v3  ;;  %v1796_v3 = vpack.i.b16 %v2970_v51, %v2968_v43  ;;  %v2289_v43 = vcombine.high %v3018_v18, %v3018_v18 }
 0x1f4   : > { %v2302_v58 = vcombine.high %v1733_v28, %v1733_v28 }
 0x1f5   : > { %1302 = vrot.lane.b32.xlu0 %v2217_v50, %s2523_s25  ;;  %v1813_v29 = vrot.slane %v1796_v3, %v2780_v42  ;;  %v1198_v3 = vsel %vm724_vm2, %v2837_v19, %v3006_v48 }
 0x1f6   : > { %v1607_v8 = vpop.permute.xlu0 %1606  ;;  %v3057_v47 = vpop.permute.xlu1 %1184 }
 0x1f7   : > { %1312 = vrot.lane.b32.xlu1 %v2288_v6, %s2525_s13  ;;  %v1637_v9 = vsel %vm728_vm3, %v1635_v4, %v1607_v8  ;;  %v1822_v37 = vcombine.low %v1813_v29, %v1821_v30  ;;  %v1823_v42 = vcombine.high %v1813_v29, %v1821_v30  ;;  %v1857_v4 = vcombine.high %v1847_v49, %v1855_v61 }
 0x1f8   : > { %v2249_v6 = vcombine.low %v1864_v1, %v1864_v1  ;;  %v730_v29 = vsel %vm728_vm3, %v727_v25, %v3022_v21 }
 0x1f9   : > { %1460 = vrot.lane.b32.xlu0 %v2228_v33, %s2527_s22  ;;  %v3100_v60 = vrot.slane %v1822_v37, %v2827_v44  ;;  %v1837_v2 = vrot.slane %v1823_v42, %v2827_v44  ;;  %v2304_v33 = vcombine.high %v1864_v1, %v1864_v1  ;;  %v1871_v7 = vrot.slane %v1857_v4, %v2827_v44  ;;  %v2017_v44 = vld [vmem:[%s3292_s7] sm:$0xf] }
 0x1fa   : > { %v1612_v15 = vpop.permute.xlu1 %1611  ;;  %v718_v45 = vpop.permute.xlu0 %717  ;;  %v733_v48 = vsel %vm731_vm4, %v730_v29, %v3036_v32 }
 0x1fb   : > { %1322 = vrot.lane.b32.xlu1 %v2221_v10, %s2527_s22  ;;  %v1639_v17 = vsel %vm731_vm4, %v1637_v9, %v1612_v15  ;;  %v2303_v50 = vcombine.high %v3100_v60, %v3100_v60  ;;  %v2252_v8 = vcombine.low %v1837_v2, %v1837_v2  ;;  %v2305_v35 = vcombine.high %v1837_v2, %v1837_v2  ;;  %v2000_v10 = vld [vmem:[%s3289_s4] sm:$0xff] }
 0x1fc   : > { %v2253_v9 = vcombine.low %v1871_v7, %v1871_v7 }
 0x1fd   : > { %1754 = vrot.lane.b32.xlu0 %v2245_v5, %s2526_s20 }
 0x1fe   : > { %v3078_v38 = vpop.permute.xlu1 %722  ;;  %v1190_v14 = vpop.permute.xlu0 %1189 }
 0x1ff   : > { %1626 = vrot.lane.b32.xlu1 %v2297_v53, %s2528_s24  ;;  %v2306_v53 = vcombine.high %v1871_v7, %v1871_v7 }
 0x201   : > { %1470 = vrot.lane.b32.xlu0 %v2294_v26, %s2529_s14  ;;  %v1200_v26 = vsel %vm728_vm3, %v1198_v3, %v3020_v20 }
 0x202   : > { %v1617_v51 = vpop.permute.xlu1 %1616  ;;  %v1195_v15 = vpop.permute.xlu0 %1194  ;;  %v1202_v19 = vsel %vm731_vm4, %v1200_v26, %v3034_v31 }
 0x203   : > { %1327 = vrot.lane.b32.xlu1 %v2289_v43, %s2528_s24  ;;  %v1641_v36 = vsel %vm734_vm5, %v1639_v17, %v1617_v51  ;;  %v1204_v13 = vsel %vm734_vm5, %v1202_v19, %v3042_v41 }
 0x204   : > { %v1206_v31 = vsel %vm737_vm6, %v1204_v13, %v3057_v47 }
 0x205   : > { %1759 = vrot.lane.b32.xlu0 %v2246_v34, %s2527_s22 }
 0x206   : > { %v1622_v18 = vpop.permute.xlu1 %1621 }
 0x207   : > { %1764 = vrot.lane.b32.xlu1 %v2301_v52, %s2528_s24  ;;  %v3096_v57 = vsel %vm737_vm6, %v1641_v36, %v1622_v18  ;;  %v1208_v52 = vsel %vm740_vm8, %v1206_v31, %v1190_v14 }
 0x209   : > { %1631 = vrot.lane.b32.xlu0 %v2298_v54, %s2529_s14 }
 0x20b   : > { %1769 = vrot.lane.b32.xlu1 %v2302_v58, %s2529_s14 }
 0x20d   : > { %1332 = vrot.lane.b32.xlu0 %v2290_v46, %s2529_s14  ;;  %v1210_v46 = vsel %vm743_vm9, %v1208_v52, %v1195_v15 }
 0x20f   : > { %1882 = vrot.lane.b32.xlu1 %v2303_v50, %s2524_s26 }
 0x211   : > { %1877 = vrot.lane.b32.xlu0 %v2249_v6, %s2523_s25 }
 0x213   : > { %1892 = vrot.lane.b32.xlu1 %v2252_v8, %s2526_s20  ;;  %v1929_v8 = vrot.slane %v1210_v46, 2  ;;  %s3305_s20 = scalar_lea.vmem [#allocation3], %s2687_s17 }
 0x215   : > { %1887 = vrot.lane.b32.xlu0 %v2304_v33, %s2525_s13  ;;  %s2087_s13 = sshll.u32 %s3305_s20, 4  ;;  %s3230_s13 = int_to_ptr.vmem [resolvable:$true] %s2087_s13 }
 0x217   : > { %1902 = vrot.lane.b32.xlu1 %v2305_v35, %s2528_s24  ;;  %s2259_s24 = sshll.u32 %s2502_s9, 1  ;;  %s3306_s9 = smov %s3305_s20 }
 0x218   : > { %s2083_s26 = sadd.s32 %s2498_s30, %s2259_s24  ;;  %s3307_s30 = sand.u32 1, %s2490_s28  }
 0x219   : > { %1897 = vrot.lane.b32.xlu0 %v2253_v9, %s2527_s22  ;;  %s2260_s25 = sshll.u32 %s2083_s26, 6  ;;  %s2072_s21 = scalar_lea.sflag [#allocation4], %s3307_s30 }
 0x21a   : > { %s3228_s1 = scalar_lea.hbm %s3293_s8, %s2260_s25  ;;  %s2420_s22 = scalar_lea.vmem %s3230_s13, 64 }
 0x21b   : > { %2003 = vperm.xlu1 %2418, %v2000_v10   ;;  %p2421_p2 = scmp.ne.s32.totalorder %s3230_s13, %s2420_s22  ;;  %s2532_s24 = smov [#allocation3]  }
 0x21c   : > { %s2424_s26 = sshll.u32 %s2532_s24, 4  ;;  %s2425_s26 = int_to_ptr.vmem [resolvable:$false] %s2424_s26 }
 0x21d   : > { %1907 = vrot.lane.b32.xlu0 %v2306_v53, %s2529_s14  ;;  %p2422_p4 = pnand %p2421_p2, %p2629_p3  ;;  %s2426_s25 = scalar_lea.vmem %s2425_s26, 128 }
 0x21e   : > { %p2427_p6 = scmp.lt.s32.totalorder %s3230_s13, %s2425_s26  ;;  %p2428_p7 = scmp.lt.s32.totalorder %s2426_s25, %s2420_s22 }
 0x21f   : > { %2020 = vperm.xlu1 %2418, %v2017_v44   ;;  %p2423_p5 = pneg %p2422_p4 }
 0x220   : > { %p2429_p9 = por %p2428_p7, %p2427_p6 }
 0x221   : > { %2010 = vperm.xlu0 %2419, %v2007_v11  }
 0x222   : > { %p2430_p10 = pnand %p2429_p9, %p2423_p5 }
 0x233   : > { %v857_v63 = vpop.permute.xlu0 %856 }
 0x234   : > { %v847_v16 = vpop.permute.xlu1 %846 }
 0x23b   : > { %v1005_v5 = vpop.permute.xlu0 %1004  ;;  %v985_v17 = vpop.permute.xlu1 %984 }
 0x23f   : > { %v842_v55 = vpop.permute.xlu0 %841  ;;  %v995_v23 = vpop.permute.xlu1 %994 }
 0x240   : > { %v875_v30 = vsel %vm724_vm2, %v2898_v24, %v842_v55  ;;  %v736_v24 = vsel %vm734_vm5, %v733_v48, %v3040_v40 }
 0x241   : > { %v877_v22 = vsel %vm728_vm3, %v875_v30, %v847_v16  ;;  %v739_v37 = vsel %vm737_vm6, %v736_v24, %v3047_v59 }
 0x242   : > { %v742_v39 = vsel %vm740_vm8, %v739_v37, %v718_v45 }
 0x243   : > { %v980_v28 = vpop.permute.xlu0 %979  ;;  %v867_v43 = vpop.permute.xlu1 %866  ;;  %v745_v2 = vsel %vm743_vm9, %v742_v39, %v3078_v38 }
 0x244   : > { %v1013_v20 = vsel %vm724_vm2, %v2916_v56, %v980_v28 }
 0x245   : > { %v1015_v32 = vsel %vm728_vm3, %v1013_v20, %v985_v17 }
 0x247   : > { %v852_v51 = vpop.permute.xlu0 %851  ;;  %v990_v49 = vpop.permute.xlu1 %989 }
 0x248   : > { %v879_v21 = vsel %vm731_vm4, %v877_v22, %v852_v51  ;;  %v1017_v41 = vsel %vm731_vm4, %v1015_v32, %v990_v49 }
 0x249   : > { %v881_v34 = vsel %vm734_vm5, %v879_v21, %v857_v63  ;;  %v1019_v18 = vsel %vm734_vm5, %v1017_v41, %v995_v23 }
 0x24b   : > { %v862_v61 = vpop.permute.xlu0 %861  ;;  %v872_v56 = vpop.permute.xlu1 %871 }
 0x24c   : > { %v883_v36 = vsel %vm737_vm6, %v881_v34, %v862_v61 }
 0x24d   : > { %v885_v40 = vsel %vm740_vm8, %v883_v36, %v867_v43 }
 0x24e   : > { %v887_v47 = vsel %vm743_vm9, %v885_v40, %v872_v56 }
 0x24f   : > { %v1000_v54 = vpop.permute.xlu0 %999  ;;  %v1925_v42 = vrot.slane %v887_v47, 6  ;;  %v1010_v59 = vpop.permute.xlu1 %1009 }
 0x250   : > { %v1021_v58 = vsel %vm737_vm6, %v1019_v18, %v1000_v54 }
 0x251   : > { %v1023_v1 = vsel %vm740_vm8, %v1021_v58, %v1005_v5  ;;  %v1938_v33 = vsel %vm1936_vm10, %v745_v2, %v1925_v42 }
 0x252   : > { %v1025_v50 = vsel %vm743_vm9, %v1023_v1, %v1010_v59 }
 0x253   : > { %v1927_v4 = vrot.slane %v1025_v50, 4  ;;  %v1745_v6 = vpop.permute.xlu0 %1744 }
 0x255   : > { %v1740_v7 = vpop.permute.xlu1 %1739  ;;  %v1941_v35 = vsel %vm1939_vm11, %v1938_v33, %v1927_v4 }
 0x256   : > { %v1944_v9 = vsel %vm1942_vm12, %v1941_v35, %v1929_v8  ;;  %v1773_v25 = vsel %vm724_vm2, %v2986_v62, %v1740_v7 }
 0x257   : > { %v1750_v10 = vpop.permute.xlu0 %1749  ;;  %2314 = vmatpush3.bf16.msra.mxu0 %v1944_v9  ;;  %v1775_v43 = vsel %vm728_vm3, %v1773_v25, %v1745_v6 }
 0x258   : > { %2315 = vmatprep.subr.bf16.mxu0 %v2530_v27  ;;  %v1777_v22 = vsel %vm731_vm4, %v1775_v43, %v1750_v10 }
 0x259   : > { %v1308_v53 = vpop.permute.xlu1 %1307 }
 0x25b   : > { %v1446_v44 = vpop.permute.xlu0 %1445 }
 0x25d   : > { %v1318_v11 = vpop.permute.xlu1 %1317 }
 0x25f   : > { %v1456_v45 = vpop.permute.xlu0 %1455 }
 0x261   : > { %v1441_v38 = vpop.permute.xlu1 %1440 }
 0x262   : > { %v1474_v55 = vsel %vm724_vm2, %v3012_v0, %v1441_v38 }
 0x263   : > { %v1466_v14 = vpop.permute.xlu0 %1465  ;;  %v1476_v26 = vsel %vm728_vm3, %v1474_v55, %v1446_v44  ;;  %v2015_v55 = vld [vmem:[%s3291_s6] sm:$0x3] }
 0x265   : > { %v1451_v15 = vpop.permute.xlu1 %1450 }
 0x266   : > { %v1478_v29 = vsel %vm731_vm4, %v1476_v26, %v1451_v15 }
 0x267   : > { %v1303_v63 = vpop.permute.xlu0 %1302  ;;  %v1480_v51 = vsel %vm734_vm5, %v1478_v29, %v1456_v45 }
 0x268   : > { %v1336_v30 = vsel %vm724_vm2, %v3003_v12, %v1303_v63 }
 0x269   : > { %v1313_v16 = vpop.permute.xlu1 %1312  ;;  %v1338_v48 = vsel %vm728_vm3, %v1336_v30, %v1308_v53 }
 0x26a   : > { %v1340_v21 = vsel %vm731_vm4, %v1338_v48, %v1313_v16 }
 0x26b   : > { %v1461_v5 = vpop.permute.xlu0 %1460  ;;  %v1342_v61 = vsel %vm734_vm5, %v1340_v21, %v1318_v11 }
 0x26c   : > { %v1482_v62 = vsel %vm737_vm6, %v1480_v51, %v1461_v5 }
 0x26d   : > { %v1323_v17 = vpop.permute.xlu1 %1322  ;;  %v1484_v12 = vsel %vm740_vm8, %v1482_v62, %v1466_v14 }
 0x26e   : > { %v1344_v56 = vsel %vm737_vm6, %v1342_v61, %v1323_v17 }
 0x26f   : > { %v1755_v3 = vpop.permute.xlu0 %1754 }
 0x270   : > { %v1779_v13 = vsel %vm734_vm5, %v1777_v22, %v1755_v3 }
 0x271   : > { %v1627_v23 = vpop.permute.xlu1 %1626 }
 0x272   : > { %v1645_v31 = vsel %vm740_vm8, %v3096_v57, %v1627_v23 }
 0x273   : > { %v1471_v28 = vpop.permute.xlu0 %1470 }
 0x274   : > { %v1486_v32 = vsel %vm743_vm9, %v1484_v12, %v1471_v28 }
 0x275   : > { %v1328_v19 = vpop.permute.xlu1 %1327  ;;  %v1931_v40 = vrot.slane %v1486_v32, 6 }
 0x276   : > { %v1346_v52 = vsel %vm740_vm8, %v1344_v56, %v1328_v19 }
 0x277   : > { %v1760_v0 = vpop.permute.xlu0 %1759 }
 0x278   : > { %v1781_v49 = vsel %vm737_vm6, %v1779_v13, %v1760_v0 }
 0x279   : > { %v1765_v20 = vpop.permute.xlu1 %1764 }
 0x27a   : > { %v1783_v34 = vsel %vm740_vm8, %v1781_v49, %v1765_v20 }
 0x27b   : > { %v1632_v24 = vpop.permute.xlu0 %1631 }
 0x27c   : > { %v1647_v41 = vsel %vm743_vm9, %v1645_v31, %v1632_v24 }
 0x27d   : > { %v1770_v36 = vpop.permute.xlu1 %1769  ;;  %v1933_v54 = vrot.slane %v1647_v41, 4 }
 0x27e   : > { %v1785_v37 = vsel %vm743_vm9, %v1783_v34, %v1770_v36 }
 0x27f   : > { %v1333_v47 = vpop.permute.xlu0 %1332  ;;  %v1935_v18 = vrot.slane %v1785_v37, 2 }
 0x280   : > { %v1348_v57 = vsel %vm743_vm9, %v1346_v52, %v1333_v47 }
 0x281   : > { %v1947_v39 = vsel %vm1936_vm10, %v1348_v57, %v1931_v40  ;;  %v1883_v42 = vpop.permute.xlu1 %1882 }
 0x282   : > { %v1949_v58 = vsel %vm1939_vm11, %v1947_v39, %v1933_v54 }
 0x283   : > { %v1878_v46 = vpop.permute.xlu0 %1877  ;;  %v1951_v1 = vsel %vm1942_vm12, %v1949_v58, %v1935_v18 }
 0x284   : > { %v1911_v59 = vsel %vm724_vm2, %v3100_v60, %v1878_v46  ;;  %2316 = vmatpush3.bf16.msra.mxu0 %v1951_v1 }
 0x285   : > { %2317 = vmatprep.subr.bf16.mxu0 %v2530_v27  ;;  %v1913_v2 = vsel %vm728_vm3, %v1911_v59, %v1883_v42  ;;  %v1893_v4 = vpop.permute.xlu1 %1892  ;;  %v1953_v27 = vld [vmem:[%s3288_s3] sm:$0xf] }
 0x287   : > { %v1888_v50 = vpop.permute.xlu0 %1887 }
 0x288   : > { %v1915_v6 = vsel %vm731_vm4, %v1913_v2, %v1888_v50 }
 0x289   : > { %v1917_v33 = vsel %vm734_vm5, %v1915_v6, %v1893_v4  ;;  %v1903_v35 = vpop.permute.xlu1 %1902 }
 0x28b   : > { %v1898_v8 = vpop.permute.xlu0 %1897 }
 0x28c   : > { %v1919_v7 = vsel %vm737_vm6, %v1917_v33, %v1898_v8 }
 0x28d   : > { %v1921_v10 = vsel %vm740_vm8, %v1919_v7, %v1903_v35 }
 0x28f   : > { %v1908_v9 = vpop.permute.xlu0 %1907 }
 0x290   : > { %v1923_v60 = vsel %vm743_vm9, %v1921_v10, %v1908_v9 }
 0x291   : > { %v1958_v53 = vsel %vm1936_vm10, %v1923_v60, 0 }
 0x292   : > { %2318 = vmatpush3.bf16.msra.mxu0 %v1958_v53 }
 0x295   : > { %2320 = vmatmul.mubr.msk.bf16.vlgmr.msra.gmra.mrb[0].mxu0 %vm1954_vm13, %v1953_v27 }
 0x29a   : > { %v2004_v44 = vpop.permute.xlu1 %2003 }
 0x29e   : > { %v2021_v23 = vpop.permute.xlu1 %2020 }
 0x2a0   : > { %v2011_v45 = vpop.permute.xlu0 %2010 }
 0x368   : > { %v1994_v11 = vpop.f32.mrb[0].mxu0 }
 0x369   : > { %v2006_v38 = vmul.f32 %v2004_v44, %v1994_v11  ;;  %v2321_v14 = vpop.f32.mrb[1].mxu0 }
 0x36a   : > { %v1997_v15 = vpop.f32.mrb[2].mxu0 }
 0x36b   : > { %v2013_v63 = vadd.f32 %v2011_v45, %v2006_v38  ;;  %v2322_v16 = vpop.f32.mrb[3].mxu0 }
 0x36d   : > { %v2014_v5 = vmax.f32 %v2013_v63, 0.0 }
 0x36f   : > { %v2016_v17 = vpack.c.bf16 %v2014_v5, %v2014_v5 }
 0x371   : > { %v2028_v3 = vsel %vm1939_vm11, %v2016_v17, 0 }
 0x372   : > { %2324 = vmatpush3.bf16.msra.mxu1 %v2028_v3 }
 0x375   : > { %2326 = vmatmul.mubr.msk.bf16.vlgmr.msra.gmra.mrb[0].mxu1 %vm2023_vm14, %v2015_v55 }
 0x448   : > { %v2064_v25 = vpop.f32.mrb[0].mxu1 }
 0x449   : > { %v2065_v26 = vadd.f32 %v2064_v25, %v2021_v23  ;;  %v2327_v28 = vpop.f32.mrb[1].mxu1 }
 0x44a   : > { %v2067_v29 = vpop.f32.mrb[2].mxu1 }
 0x44b   : > { %2070 = vst [vmem:[%s3306_s9] sm:$0xf] %v2065_v26  ;;  %v2328_v30 = vpop.f32.mrb[3].mxu1 }
 0x44c   : > { %2433 = shalt.err (!%p2430_p10)
}
 0x44d   : > { %s2434_s17 = scalar_lea.hbm %s3228_s1, 64  ;;  %s2438_s14 = scalar_lea.hbm %s3293_s8, 256 }
 0x44e   : > { %p2435_p11 = scmp.ne.s32.totalorder %s3228_s1, %s2434_s17  ;;  %p2439_p0 = scmp.lt.u32.totalorder %s3228_s1, %s3293_s8 }
 0x44f   : > { %p2440_p1 = scmp.lt.u32.totalorder %s2438_s14, %s2434_s17  ;;  %p2442_p4 = scmp.lt.u32.totalorder %s2434_s17, %s3228_s1 }
 0x450   : > { %p2436_p12 = pnand %p2435_p11, %p2629_p3 }
 0x451   : > { %p2441_p2 = por %p2440_p1, %p2439_p0 }
 0x452   : > { %p2437_p13 = pneg %p2436_p12 }
 0x453   : > { %p2443_p5 = por %p2442_p4, %p2441_p2 }
 0x455   : > { %p2444_p6 = pnand %p2443_p5, %p2437_p13 }
 0x457   : > { %2447 = shalt.err (!%p2444_p6)
}
 0x458   : > { %2329 = dma.vmem_to_hbm [thread:$0]  (%p2629_p3), %s3230_s13, 64, %s3228_s1, %s2072_s21  }
 0x459 PF: > { %p2335_p7 = scmp.ge.s32.totalorder %s2514_s12, 2  ;;  %s2099_s22 = sand.u32 1, %s2486_s27  }
 0x45a   : > { %s2100_s24 = scalar_lea.sflag [#allocation4], %s2099_s22 }
 0x45b   : > { %p2332_p9 = pnand %p2335_p7, %p2638_p8 }
 0x45d   : > { %2481 = dma.done.wait (!%p2332_p9), %s2100_s24, 64  }
 0x45e   : > { %2483 = vsyncadd (!%p2332_p9), %s2100_s24, 4294967232  ;;  %s21_s12 = sadd.s32 1, %s2514_s12   ;;  %s3308_s27 = smov %s2490_s28 }
 0x45f   : > { %p18_p10 = scmp.ge.s32.totalorder %s21_s12, 6   ;;  %s3309_s28 = smov %s2494_s29 }
 0x460   : > { %s3310_s29 = smov %s2647_s23  ;;  %s3311_s30 = smov %s2506_s10 }
 0x461   : > { %s3312_s9 = smov %s2510_s11  ;;  %s3313_s10 = smov %s3316_s15 }
 0x462   : > { %s3314_s11 = smov %s3320_s16  ;;  %20 = sbr.rel (!%p18_p10) target bundleno = 8 (0x8), region = 95 }
 0x469   :  { %2105 = vsyncpa [#allocation4], 1 }
 0x46a   :  { %2107 = vsyncpa [#allocation4 + $0x1], 1 }

</bundles_post_ra>
